<compile_context>
chip_gen: v5e
topology: v5e:2x2
jax: 0.10.0
libtpu: 0.0.40
codegen_flags: <defaults>
</compile_context>

<pallas_src>
import jax
import jax.numpy as jnp
from jax import lax
from jax.experimental import pallas as pl
from jax.experimental.pallas import tpu as pltpu


# ----------------------------- Pallas kernel --------------------------------

def _make_dkvmn_kernel(use_bf16):
    """Builds the kernel; `use_bf16` statically selects bf16 MXU operands."""
    cast = (lambda x: x.astype(jnp.bfloat16)) if use_bf16 else (lambda x: x)

    def mm(x, y):                       # x @ y, f32 accumulation
        return jnp.dot(cast(x), cast(y), preferred_element_type=jnp.float32)

    def mm_nt(x, y):                    # contract last dims of both (x @ y.T)
        return lax.dot_general(cast(x), cast(y),
                               (((1,), (1,)), ((), ())),
                               preferred_element_type=jnp.float32)

    def kernel(ktm_ref, kbm_ref, v_ref, mk_ref, mv0_ref, r_ref,
               wea_ref, bea_ref, wfr_ref, wfk_ref, bf_ref, wpw_ref, bpw_ref,
               p_ref,
               w_pack_scr, e_pack_scr, a_pack_scr):
        _, L, BB, D = ktm_ref.shape
        M = mk_ref.shape[0]

        # ---- correlation weights (softmax over memory slots), computed
        #      transposed: rows = memory slots, cols = time-major batch*time ---
        k_tm = ktm_ref[...].reshape(L * BB, D)                  # row = t*BB + b
        logits_t = mm_nt(mk_ref[...], k_tm)                     # (M, L*BB)
        logits_t = logits_t - jnp.max(logits_t, axis=0, keepdims=True)
        ew = jnp.exp(logits_t)
        inv = pl.reciprocal(jnp.sum(ew, axis=0, keepdims=True), approx=True)
        w_tr = ew * inv                                         # (M, L*BB)

        # Stage lane-packed correlation weights:
        #   w_pack_scr[t][m, b*D + d] = w[batch b, step t, slot m]
        for t in range(L):
            wt = w_tr[:, t * BB:(t + 1) * BB]                   # (M, BB)
            if BB < 8:
                # tiny blocks: plain lane-splat per batch element
                for b in range(BB):
                    w_pack_scr[t, :, b * D:(b + 1) * D] = (
                        jnp.broadcast_to(wt[:, b:b + 1], (M, D)))
            else:
                # one small replication matmul per step (R is 0/1, exact)
                w_pack_scr[t] = jnp.dot(wt, r_ref[...],
                                        preferred_element_type=jnp.float32)

        # ---- erase / add projections (fused into one matmul) ----------------
        v_flat = v_ref[...].reshape(BB * L, D)                  # row = b*L + t
        ea = mm(v_flat, wea_ref[...]) + bea_ref[...]            # (BB*L, 2D)
        e = jax.nn.sigmoid(ea[:, :D])
        a = jnp.tanh(ea[:, D:])
        # lane-pack:  e_pack_scr[t, b*D + d] = e[b, t, d]
        for b in range(BB):
            e_pack_scr[:, b * D:(b + 1) * D] = e[b * L:(b + 1) * L, :]
            a_pack_scr[:, b * D:(b + 1) * D] = a[b * L:(b + 1) * L, :]

        # ---- serial recurrence over time (lane-packed over the batch block) -
        Mvt = mv0_ref[...]                                      # (M, BB*D)
        reads = []
        for t in range(L):
            wt = w_pack_scr[t]                                  # (M, BB*D)
            et = e_pack_scr[t:t + 1, :]                         # (1, BB*D)
            at = a_pack_scr[t:t + 1, :]
            # readout uses the memory *before* this step's write
            reads.append(jnp.sum(wt * Mvt, axis=0, keepdims=True))
            Mvt = Mvt * (1.0 - wt * et) + wt * at
        read_p = jnp.concatenate(reads, axis=0)                 # (L, BB*D)

        # un-pack readouts to batch-major rows (static lane slices only)
        read_flat = jnp.concatenate(
            [read_p[:, b * D:(b + 1) * D] for b in range(BB)], axis=0)

        # ---- f = tanh(Linear([readout, k]))  (concat folded into split W) ---
        k_bm = kbm_ref[...].reshape(BB * L, D)                  # row = b*L + t
        f = jnp.tanh(mm(read_flat, wfr_ref[...])
                     + mm(k_bm, wfk_ref[...]) + bf_ref[...])
        # TODO(synk): dropout_layer is identity in eval mode; train-mode dropout not implemented.
        p_ref[...] = jax.nn.sigmoid(mm(f, wpw_ref[...]) + bpw_ref[...])

    return kernel


# ------------------------------ JAX wrapper ----------------------------------

def dkvmn_forward(q, r, params, batch_block=32, mxu_bf16=None):
    # Embedding gathers (glue, not the hot path).
    k = jnp.take(params["k_emb"], q, axis=0)                    # (B, L, D)
    v = jnp.take(params["v_emb"], r, axis=0)                    # (B, L, D)
    B, L, D = k.shape
    M = params["Mk"].shape[0]
    P = params["Wp"].shape[1]
    P_PAD = 128                                                 # lane-dense out

    # Batch block: large enough to fill the MXU / amortize per-step overhead,
    # capped so the grid stays >= 2 (v7x has two TensorCores).  Ragged batches
    # are zero-padded and sliced off afterwards.
    bb = max(1, min(batch_block, B // 2)) if B >= 2 else 1
    n_blk = -(-B // bb)
    B_pad = n_blk * bb
    if B_pad != B:
        pad = ((0, B_pad - B), (0, 0), (0, 0))
        k = jnp.pad(k, pad)
        v = jnp.pad(v, pad)

    if mxu_bf16 is None:
        mxu_bf16 = (bb * L) >= 256     # only once the slabs are MXU-sized

    # Time-major copy of k for the correlation-weight path (wrapper-side).
    k_tm = k.reshape(n_blk, bb, L, D).transpose(0, 2, 1, 3)     # (n_blk,L,bb,D)

    # Fused erase/add weights, padded output projection, lane-packed Mv0 and
    # the 0/1 lane-replication matrix R -- all built once, in XLA.
    W_ea = jnp.concatenate([params["We"], params["Wa"]], axis=1)      # (D, 2D)
    b_ea = jnp.concatenate([params["be"], params["ba"]], axis=1)      # (1, 2D)
    Wp_pad = jnp.zeros((D, P_PAD), jnp.float32).at[:, :P].set(params["Wp"])
    bp_pad = jnp.zeros((1, P_PAD), jnp.float32).at[:, :P].set(params["bp"])
    Mv0_p = jnp.tile(params["Mv0"], (1, bb))                          # (M, bb*D)
    R = jnp.repeat(jnp.eye(bb, dtype=jnp.float32), D, axis=1)         # (bb, bb*D)

    def full(shape):
        n = len(shape)
        return pl.BlockSpec(shape, lambda j, _n=n: (0,) * _n)

    in_specs = [
        pl.BlockSpec((1, L, bb, D), lambda j: (j, 0, 0, 0)),   # k (time-major)
        pl.BlockSpec((bb, L, D), lambda j: (j, 0, 0)),         # k (batch-major)
        pl.BlockSpec((bb, L, D), lambda j: (j, 0, 0)),         # v
        full((M, D)),            # Mk
        full((M, bb * D)),       # Mv0, lane-packed
        full((bb, bb * D)),      # replication matrix R
        full((D, 2 * D)),        # fused We|Wa
        full((1, 2 * D)),        # fused be|ba
        full((D, D)),            # Wf (readout half)
        full((D, D)),            # Wf (k half)
        full((1, D)),            # bf
        full((D, P_PAD)),        # Wp (padded)
        full((1, P_PAD)),        # bp (padded)
    ]
    out_spec = pl.BlockSpec((bb * L, P_PAD), lambda j: (j, 0))

    fn = pl.pallas_call(
        _make_dkvmn_kernel(mxu_bf16),
        out_shape=jax.ShapeDtypeStruct((B_pad * L, P_PAD), jnp.float32),
        grid_spec=pltpu.PrefetchScalarGridSpec(
            num_scalar_prefetch=0,
            grid=(n_blk,),
            in_specs=in_specs,
            out_specs=out_spec,
            scratch_shapes=[
                pltpu.VMEM((L, M, bb * D), jnp.float32),   # packed w
                pltpu.VMEM((L, bb * D), jnp.float32),      # packed e
                pltpu.VMEM((L, bb * D), jnp.float32),      # packed a
            ],
        ),
        compiler_params=pltpu.CompilerParams(
            dimension_semantics=("parallel",)),
    )
    p = fn(k_tm, k, v, params["Mk"], Mv0_p, R, W_ea, b_ea,
           params["Wf_r"], params["Wf_k"], params["bf"], Wp_pad, bp_pad)
    return p.reshape(B_pad, L, P_PAD)[:B, :, :P]


# --------------------------- Pure-JAX reference -------------------------------

def dkvmn_ref(q, r, params):
    k = jnp.take(params["k_emb"], q, axis=0)
    v = jnp.take(params["v_emb"], r, axis=0)
    B, L, D = k.shape
    Mk, Mv0 = params["Mk"], params["Mv0"]
    w = jax.nn.softmax(jnp.einsum('bld,md->blm', k, Mk), axis=-1)      # (B,L,M)
    e = jax.nn.sigmoid(v @ params["We"] + params["be"][0])
    a = jnp.tanh(v @ params["Wa"] + params["ba"][0])
    Mvt0 = jnp.broadcast_to(Mv0, (B,) + Mv0.shape)

    def step(Mvt, inp):
        wt, et, at = inp
        read = jnp.einsum('bm,bmd->bd', wt, Mvt)
        Mvt = (Mvt * (1.0 - wt[..., None] * et[:, None, :])
               + wt[..., None] * at[:, None, :])
        return Mvt, read

    _, reads = lax.scan(step, Mvt0,
                        (w.transpose(1, 0, 2), e.transpose(1, 0, 2),
                         a.transpose(1, 0, 2)))
    reads = reads.transpose(1, 0, 2)                                    # (B,L,D)
    f = jnp.tanh(reads @ params["Wf_r"] + k @ params["Wf_k"] + params["bf"][0])
    return jax.nn.sigmoid(f @ params["Wp"] + params["bp"][0])


# --------------------------------- Main ---------------------------------------

def init_params(key, num_c, dim_s, size_m):
    ks = jax.random.split(key, 12)

    def kaiming(k, shape):
        fan_in = shape[-1]
        return (jax.random.normal(k, shape, jnp.float32)
                * jnp.sqrt(2.0 / fan_in)).astype(jnp.float32)

    def lin_w(k, fan_in, fan_out):
        # stored already transposed: (in, out)
        return (jax.random.normal(k, (fan_in, fan_out), jnp.float32)
                * (1.0 / jnp.sqrt(fan_in))).astype(jnp.float32)

    k_emb = jax.random.normal(ks[0], (num_c + 1, dim_s), jnp.float32)
    k_emb = k_emb.at[num_c].set(0.0)                          # padding_idx row
    v_emb = jax.random.normal(ks[1], (2 * num_c + 2, dim_s), jnp.float32)
    v_emb = v_emb.at[2 * num_c + 1].set(0.0)                  # padding_idx row

    Wf_full = lin_w(ks[6], 2 * dim_s, dim_s)                  # f_layer, split
    params = {
        "k_emb": k_emb,
        "v_emb": v_emb,
        "Mk": kaiming(ks[2], (size_m, dim_s)),
        "Mv0": kaiming(ks[3], (size_m, dim_s)),
        "We": lin_w(ks[4], dim_s, dim_s),
        "be": jax.random.normal(ks[5], (1, dim_s), jnp.float32) * 0.01,
        "Wa": lin_w(ks[7], dim_s, dim_s),
        "ba": jax.random.normal(ks[8], (1, dim_s), jnp.float32) * 0.01,
        "Wf_r": Wf_full[:dim_s],                 # applied to the readout
        "Wf_k": Wf_full[dim_s:],                 # applied to k (cat [read, k])
        "bf": jax.random.normal(ks[9], (1, dim_s), jnp.float32) * 0.01,
        "Wp": lin_w(ks[10], dim_s, 10),
        "bp": jax.random.normal(ks[11], (1, 10), jnp.float32) * 0.01,
    }
    return params


if __name__ == "__main__":
    # f32 reference matmuls at full precision so the tolerance can be tight.
    jax.config.update("jax_default_matmul_precision", "highest")

    num_c, dim_s, size_m = 10, 32, 16
    B, L = 4, 8

    key = jax.random.PRNGKey(0)
    kp, kq, kr = jax.random.split(key, 3)
    params = init_params(kp, num_c, dim_s, size_m)

    q = jax.random.randint(kq, (B, L), 0, num_c, dtype=jnp.int32)
    r = jax.random.randint(kr, (B, L), 0, 2 * num_c, dtype=jnp.int32)

    p = jax.block_until_ready(dkvmn_forward(q, r, params))
    p_ref = jax.block_until_ready(dkvmn_ref(q, r, params))

    assert p.shape == (B, L, 10), p.shape
    err = float(jnp.max(jnp.abs(p - p_ref)))
    # All-f32 kernel except the approx (EUP) reciprocal in the softmax
    # (~2^-12 relative), so 2e-3 is comfortable but still meaningful.
    assert jnp.allclose(p, p_ref, atol=2e-3, rtol=2e-3), err
    print("KERNEL_OK")
</pallas_src>

<mosaic_0001>
module attributes {stable_mosaic.version = 11 : i64} {
  func.func @kernel(%arg0: i32, %arg1: memref<1x8x2x32xf32, #tpu.memory_space<vmem>>, %arg2: memref<2x8x32xf32, #tpu.memory_space<vmem>>, %arg3: memref<2x8x32xf32, #tpu.memory_space<vmem>>, %arg4: memref<16x32xf32, #tpu.memory_space<vmem>>, %arg5: memref<16x64xf32, #tpu.memory_space<vmem>>, %arg6: memref<2x64xf32, #tpu.memory_space<vmem>>, %arg7: memref<32x64xf32, #tpu.memory_space<vmem>>, %arg8: memref<1x64xf32, #tpu.memory_space<vmem>>, %arg9: memref<32x32xf32, #tpu.memory_space<vmem>>, %arg10: memref<32x32xf32, #tpu.memory_space<vmem>>, %arg11: memref<1x32xf32, #tpu.memory_space<vmem>>, %arg12: memref<32x128xf32, #tpu.memory_space<vmem>>, %arg13: memref<1x128xf32, #tpu.memory_space<vmem>>, %arg14: memref<16x128xf32, #tpu.memory_space<vmem>>, %arg15: memref<8x16x64xf32, #tpu.memory_space<vmem>>, %arg16: memref<8x64xf32, #tpu.memory_space<vmem>>, %arg17: memref<8x64xf32, #tpu.memory_space<vmem>>) attributes {dimension_semantics = [#tpu.dimension_semantics<parallel>], iteration_bounds = array<i64: 2>, scalar_prefetch = 0 : i64, scratch_operands = 3 : i64, tpu.core_type = #tpu.core_type<tc>, window_params = [{transform_indices = @transform_0, window_bounds = array<i64: 1, 8, 2, 32>}, {transform_indices = @transform_1, window_bounds = array<i64: 2, 8, 32>}, {transform_indices = @transform_2, window_bounds = array<i64: 2, 8, 32>}, {pipeline_mode = #tpu.pipeline_mode<synchronous>, transform_indices = @transform_3, window_bounds = array<i64: 16, 32>}, {pipeline_mode = #tpu.pipeline_mode<synchronous>, transform_indices = @transform_4, window_bounds = array<i64: 16, 64>}, {pipeline_mode = #tpu.pipeline_mode<synchronous>, transform_indices = @transform_5, window_bounds = array<i64: 2, 64>}, {pipeline_mode = #tpu.pipeline_mode<synchronous>, transform_indices = @transform_6, window_bounds = array<i64: 32, 64>}, {pipeline_mode = #tpu.pipeline_mode<synchronous>, transform_indices = @transform_7, window_bounds = array<i64: 1, 64>}, {pipeline_mode = #tpu.pipeline_mode<synchronous>, transform_indices = @transform_8, window_bounds = array<i64: 32, 32>}, {pipeline_mode = #tpu.pipeline_mode<synchronous>, transform_indices = @transform_9, window_bounds = array<i64: 32, 32>}, {pipeline_mode = #tpu.pipeline_mode<synchronous>, transform_indices = @transform_10, window_bounds = array<i64: 1, 32>}, {pipeline_mode = #tpu.pipeline_mode<synchronous>, transform_indices = @transform_11, window_bounds = array<i64: 32, 128>}, {pipeline_mode = #tpu.pipeline_mode<synchronous>, transform_indices = @transform_12, window_bounds = array<i64: 1, 128>}, {transform_indices = @transform_13, window_bounds = array<i64: 16, 128>}]} {
    %c0 = arith.constant 0 : index
    %c0_0 = arith.constant 0 : index
    %c0_1 = arith.constant 0 : index
    %c0_2 = arith.constant 0 : index
    %0 = vector.load %arg1[%c0, %c0_0, %c0_1, %c0_2] : memref<1x8x2x32xf32, #tpu.memory_space<vmem>>, vector<1x8x2x32xf32>
    %1 = vector.shape_cast %0 : vector<1x8x2x32xf32> to vector<16x32xf32>
    %c0_3 = arith.constant 0 : index
    %c0_4 = arith.constant 0 : index
    %2 = vector.load %arg4[%c0_3, %c0_4] : memref<16x32xf32, #tpu.memory_space<vmem>>, vector<16x32xf32>
    %cst = arith.constant dense<0.000000e+00> : vector<16x16xf32>
    %3 = tpu.matmul %2, %1, %cst {dimension_numbers = #tpu.dot_dimension_numbers<[1], [1], [0], [0], [0, 0, 1, 0], [], []>, precision = #tpu.contract_precision<fp32>} : vector<16x32xf32>, vector<16x32xf32>, vector<16x16xf32> -> vector<16x16xf32>
    %cst_5 = arith.constant dense<0xFF800000> : vector<16xf32>
    %4 = vector.multi_reduction <maximumf>, %3, %cst_5 [0] : vector<16x16xf32> to vector<16xf32>
    %5 = vector.shape_cast %4 : vector<16xf32> to vector<1x16xf32>
    %6 = vector.broadcast %5 : vector<1x16xf32> to vector<16x16xf32>
    %7 = arith.subf %3, %6 : vector<16x16xf32>
    %8 = math.exp %7 : vector<16x16xf32>
    %cst_6 = arith.constant dense<0.000000e+00> : vector<16xf32>
    %9 = vector.multi_reduction <add>, %8, %cst_6 [0] : vector<16x16xf32> to vector<16xf32>
    %10 = vector.shape_cast %9 : vector<16xf32> to vector<1x16xf32>
    %11 = tpu.reciprocal %10 {approx = true} : vector<1x16xf32> -> vector<1x16xf32>
    %12 = vector.broadcast %11 : vector<1x16xf32> to vector<16x16xf32>
    %13 = arith.mulf %8, %12 : vector<16x16xf32>
    %14 = vector.extract_strided_slice %13 {offsets = [0, 0], sizes = [16, 2], strides = [1, 1]} : vector<16x16xf32> to vector<16x2xf32>
    %15 = vector.extract_strided_slice %14 {offsets = [0, 0], sizes = [16, 1], strides = [1, 1]} : vector<16x2xf32> to vector<16x1xf32>
    %16 = vector.shape_cast %15 : vector<16x1xf32> to vector<16x1xf32>
    %17 = vector.broadcast %16 : vector<16x1xf32> to vector<16x32xf32>
    %c0_7 = arith.constant 0 : index
    %c0_8 = arith.constant 0 : index
    %c0_9 = arith.constant 0 : index
    %18 = vector.load %arg15[%c0_7, %c0_8, %c0_9] : memref<8x16x64xf32, #tpu.memory_space<vmem>>, vector<1x16x32xf32>
    %19 = vector.shape_cast %18 : vector<1x16x32xf32> to vector<16x32xf32>
    %20 = vector.shape_cast %17 : vector<16x32xf32> to vector<1x16x32xf32>
    tpu.vector_store %arg15[%c0_7, %c0_8, %c0_9], %20 {strides = array<i32>} : memref<8x16x64xf32, #tpu.memory_space<vmem>>, vector<1x16x32xf32>,
    %21 = vector.extract_strided_slice %14 {offsets = [0, 1], sizes = [16, 1], strides = [1, 1]} : vector<16x2xf32> to vector<16x1xf32>
    %22 = vector.shape_cast %21 : vector<16x1xf32> to vector<16x1xf32>
    %23 = vector.broadcast %22 : vector<16x1xf32> to vector<16x32xf32>
    %c0_10 = arith.constant 0 : index
    %c0_11 = arith.constant 0 : index
    %c32 = arith.constant 32 : index
    %24 = vector.load %arg15[%c0_10, %c0_11, %c32] : memref<8x16x64xf32, #tpu.memory_space<vmem>>, vector<1x16x32xf32>
    %25 = vector.shape_cast %24 : vector<1x16x32xf32> to vector<16x32xf32>
    %26 = vector.shape_cast %23 : vector<16x32xf32> to vector<1x16x32xf32>
    tpu.vector_store %arg15[%c0_10, %c0_11, %c32], %26 {strides = array<i32>} : memref<8x16x64xf32, #tpu.memory_space<vmem>>, vector<1x16x32xf32>,
    %27 = vector.extract_strided_slice %13 {offsets = [0, 2], sizes = [16, 2], strides = [1, 1]} : vector<16x16xf32> to vector<16x2xf32>
    %28 = vector.extract_strided_slice %27 {offsets = [0, 0], sizes = [16, 1], strides = [1, 1]} : vector<16x2xf32> to vector<16x1xf32>
    %29 = vector.shape_cast %28 : vector<16x1xf32> to vector<16x1xf32>
    %30 = vector.broadcast %29 : vector<16x1xf32> to vector<16x32xf32>
    %c1 = arith.constant 1 : index
    %c0_12 = arith.constant 0 : index
    %c0_13 = arith.constant 0 : index
    %31 = vector.load %arg15[%c1, %c0_12, %c0_13] : memref<8x16x64xf32, #tpu.memory_space<vmem>>, vector<1x16x32xf32>
    %32 = vector.shape_cast %31 : vector<1x16x32xf32> to vector<16x32xf32>
    %33 = vector.shape_cast %30 : vector<16x32xf32> to vector<1x16x32xf32>
    tpu.vector_store %arg15[%c1, %c0_12, %c0_13], %33 {strides = array<i32>} : memref<8x16x64xf32, #tpu.memory_space<vmem>>, vector<1x16x32xf32>,
    %34 = vector.extract_strided_slice %27 {offsets = [0, 1], sizes = [16, 1], strides = [1, 1]} : vector<16x2xf32> to vector<16x1xf32>
    %35 = vector.shape_cast %34 : vector<16x1xf32> to vector<16x1xf32>
    %36 = vector.broadcast %35 : vector<16x1xf32> to vector<16x32xf32>
    %c1_14 = arith.constant 1 : index
    %c0_15 = arith.constant 0 : index
    %c32_16 = arith.constant 32 : index
    %37 = vector.load %arg15[%c1_14, %c0_15, %c32_16] : memref<8x16x64xf32, #tpu.memory_space<vmem>>, vector<1x16x32xf32>
    %38 = vector.shape_cast %37 : vector<1x16x32xf32> to vector<16x32xf32>
    %39 = vector.shape_cast %36 : vector<16x32xf32> to vector<1x16x32xf32>
    tpu.vector_store %arg15[%c1_14, %c0_15, %c32_16], %39 {strides = array<i32>} : memref<8x16x64xf32, #tpu.memory_space<vmem>>, vector<1x16x32xf32>,
    %40 = vector.extract_strided_slice %13 {offsets = [0, 4], sizes = [16, 2], strides = [1, 1]} : vector<16x16xf32> to vector<16x2xf32>
    %41 = vector.extract_strided_slice %40 {offsets = [0, 0], sizes = [16, 1], strides = [1, 1]} : vector<16x2xf32> to vector<16x1xf32>
    %42 = vector.shape_cast %41 : vector<16x1xf32> to vector<16x1xf32>
    %43 = vector.broadcast %42 : vector<16x1xf32> to vector<16x32xf32>
    %c2 = arith.constant 2 : index
    %c0_17 = arith.constant 0 : index
    %c0_18 = arith.constant 0 : index
    %44 = vector.load %arg15[%c2, %c0_17, %c0_18] : memref<8x16x64xf32, #tpu.memory_space<vmem>>, vector<1x16x32xf32>
    %45 = vector.shape_cast %44 : vector<1x16x32xf32> to vector<16x32xf32>
    %46 = vector.shape_cast %43 : vector<16x32xf32> to vector<1x16x32xf32>
    tpu.vector_store %arg15[%c2, %c0_17, %c0_18], %46 {strides = array<i32>} : memref<8x16x64xf32, #tpu.memory_space<vmem>>, vector<1x16x32xf32>,
    %47 = vector.extract_strided_slice %40 {offsets = [0, 1], sizes = [16, 1], strides = [1, 1]} : vector<16x2xf32> to vector<16x1xf32>
    %48 = vector.shape_cast %47 : vector<16x1xf32> to vector<16x1xf32>
    %49 = vector.broadcast %48 : vector<16x1xf32> to vector<16x32xf32>
    %c2_19 = arith.constant 2 : index
    %c0_20 = arith.constant 0 : index
    %c32_21 = arith.constant 32 : index
    %50 = vector.load %arg15[%c2_19, %c0_20, %c32_21] : memref<8x16x64xf32, #tpu.memory_space<vmem>>, vector<1x16x32xf32>
    %51 = vector.shape_cast %50 : vector<1x16x32xf32> to vector<16x32xf32>
    %52 = vector.shape_cast %49 : vector<16x32xf32> to vector<1x16x32xf32>
    tpu.vector_store %arg15[%c2_19, %c0_20, %c32_21], %52 {strides = array<i32>} : memref<8x16x64xf32, #tpu.memory_space<vmem>>, vector<1x16x32xf32>,
    %53 = vector.extract_strided_slice %13 {offsets = [0, 6], sizes = [16, 2], strides = [1, 1]} : vector<16x16xf32> to vector<16x2xf32>
    %54 = vector.extract_strided_slice %53 {offsets = [0, 0], sizes = [16, 1], strides = [1, 1]} : vector<16x2xf32> to vector<16x1xf32>
    %55 = vector.shape_cast %54 : vector<16x1xf32> to vector<16x1xf32>
    %56 = vector.broadcast %55 : vector<16x1xf32> to vector<16x32xf32>
    %c3 = arith.constant 3 : index
    %c0_22 = arith.constant 0 : index
    %c0_23 = arith.constant 0 : index
    %57 = vector.load %arg15[%c3, %c0_22, %c0_23] : memref<8x16x64xf32, #tpu.memory_space<vmem>>, vector<1x16x32xf32>
    %58 = vector.shape_cast %57 : vector<1x16x32xf32> to vector<16x32xf32>
    %59 = vector.shape_cast %56 : vector<16x32xf32> to vector<1x16x32xf32>
    tpu.vector_store %arg15[%c3, %c0_22, %c0_23], %59 {strides = array<i32>} : memref<8x16x64xf32, #tpu.memory_space<vmem>>, vector<1x16x32xf32>,
    %60 = vector.extract_strided_slice %53 {offsets = [0, 1], sizes = [16, 1], strides = [1, 1]} : vector<16x2xf32> to vector<16x1xf32>
    %61 = vector.shape_cast %60 : vector<16x1xf32> to vector<16x1xf32>
    %62 = vector.broadcast %61 : vector<16x1xf32> to vector<16x32xf32>
    %c3_24 = arith.constant 3 : index
    %c0_25 = arith.constant 0 : index
    %c32_26 = arith.constant 32 : index
    %63 = vector.load %arg15[%c3_24, %c0_25, %c32_26] : memref<8x16x64xf32, #tpu.memory_space<vmem>>, vector<1x16x32xf32>
    %64 = vector.shape_cast %63 : vector<1x16x32xf32> to vector<16x32xf32>
    %65 = vector.shape_cast %62 : vector<16x32xf32> to vector<1x16x32xf32>
    tpu.vector_store %arg15[%c3_24, %c0_25, %c32_26], %65 {strides = array<i32>} : memref<8x16x64xf32, #tpu.memory_space<vmem>>, vector<1x16x32xf32>,
    %66 = vector.extract_strided_slice %13 {offsets = [0, 8], sizes = [16, 2], strides = [1, 1]} : vector<16x16xf32> to vector<16x2xf32>
    %67 = vector.extract_strided_slice %66 {offsets = [0, 0], sizes = [16, 1], strides = [1, 1]} : vector<16x2xf32> to vector<16x1xf32>
    %68 = vector.shape_cast %67 : vector<16x1xf32> to vector<16x1xf32>
    %69 = vector.broadcast %68 : vector<16x1xf32> to vector<16x32xf32>
    %c4 = arith.constant 4 : index
    %c0_27 = arith.constant 0 : index
    %c0_28 = arith.constant 0 : index
    %70 = vector.load %arg15[%c4, %c0_27, %c0_28] : memref<8x16x64xf32, #tpu.memory_space<vmem>>, vector<1x16x32xf32>
    %71 = vector.shape_cast %70 : vector<1x16x32xf32> to vector<16x32xf32>
    %72 = vector.shape_cast %69 : vector<16x32xf32> to vector<1x16x32xf32>
    tpu.vector_store %arg15[%c4, %c0_27, %c0_28], %72 {strides = array<i32>} : memref<8x16x64xf32, #tpu.memory_space<vmem>>, vector<1x16x32xf32>,
    %73 = vector.extract_strided_slice %66 {offsets = [0, 1], sizes = [16, 1], strides = [1, 1]} : vector<16x2xf32> to vector<16x1xf32>
    %74 = vector.shape_cast %73 : vector<16x1xf32> to vector<16x1xf32>
    %75 = vector.broadcast %74 : vector<16x1xf32> to vector<16x32xf32>
    %c4_29 = arith.constant 4 : index
    %c0_30 = arith.constant 0 : index
    %c32_31 = arith.constant 32 : index
    %76 = vector.load %arg15[%c4_29, %c0_30, %c32_31] : memref<8x16x64xf32, #tpu.memory_space<vmem>>, vector<1x16x32xf32>
    %77 = vector.shape_cast %76 : vector<1x16x32xf32> to vector<16x32xf32>
    %78 = vector.shape_cast %75 : vector<16x32xf32> to vector<1x16x32xf32>
    tpu.vector_store %arg15[%c4_29, %c0_30, %c32_31], %78 {strides = array<i32>} : memref<8x16x64xf32, #tpu.memory_space<vmem>>, vector<1x16x32xf32>,
    %79 = vector.extract_strided_slice %13 {offsets = [0, 10], sizes = [16, 2], strides = [1, 1]} : vector<16x16xf32> to vector<16x2xf32>
    %80 = vector.extract_strided_slice %79 {offsets = [0, 0], sizes = [16, 1], strides = [1, 1]} : vector<16x2xf32> to vector<16x1xf32>
    %81 = vector.shape_cast %80 : vector<16x1xf32> to vector<16x1xf32>
    %82 = vector.broadcast %81 : vector<16x1xf32> to vector<16x32xf32>
    %c5 = arith.constant 5 : index
    %c0_32 = arith.constant 0 : index
    %c0_33 = arith.constant 0 : index
    %83 = vector.load %arg15[%c5, %c0_32, %c0_33] : memref<8x16x64xf32, #tpu.memory_space<vmem>>, vector<1x16x32xf32>
    %84 = vector.shape_cast %83 : vector<1x16x32xf32> to vector<16x32xf32>
    %85 = vector.shape_cast %82 : vector<16x32xf32> to vector<1x16x32xf32>
    tpu.vector_store %arg15[%c5, %c0_32, %c0_33], %85 {strides = array<i32>} : memref<8x16x64xf32, #tpu.memory_space<vmem>>, vector<1x16x32xf32>,
    %86 = vector.extract_strided_slice %79 {offsets = [0, 1], sizes = [16, 1], strides = [1, 1]} : vector<16x2xf32> to vector<16x1xf32>
    %87 = vector.shape_cast %86 : vector<16x1xf32> to vector<16x1xf32>
    %88 = vector.broadcast %87 : vector<16x1xf32> to vector<16x32xf32>
    %c5_34 = arith.constant 5 : index
    %c0_35 = arith.constant 0 : index
    %c32_36 = arith.constant 32 : index
    %89 = vector.load %arg15[%c5_34, %c0_35, %c32_36] : memref<8x16x64xf32, #tpu.memory_space<vmem>>, vector<1x16x32xf32>
    %90 = vector.shape_cast %89 : vector<1x16x32xf32> to vector<16x32xf32>
    %91 = vector.shape_cast %88 : vector<16x32xf32> to vector<1x16x32xf32>
    tpu.vector_store %arg15[%c5_34, %c0_35, %c32_36], %91 {strides = array<i32>} : memref<8x16x64xf32, #tpu.memory_space<vmem>>, vector<1x16x32xf32>,
    %92 = vector.extract_strided_slice %13 {offsets = [0, 12], sizes = [16, 2], strides = [1, 1]} : vector<16x16xf32> to vector<16x2xf32>
    %93 = vector.extract_strided_slice %92 {offsets = [0, 0], sizes = [16, 1], strides = [1, 1]} : vector<16x2xf32> to vector<16x1xf32>
    %94 = vector.shape_cast %93 : vector<16x1xf32> to vector<16x1xf32>
    %95 = vector.broadcast %94 : vector<16x1xf32> to vector<16x32xf32>
    %c6 = arith.constant 6 : index
    %c0_37 = arith.constant 0 : index
    %c0_38 = arith.constant 0 : index
    %96 = vector.load %arg15[%c6, %c0_37, %c0_38] : memref<8x16x64xf32, #tpu.memory_space<vmem>>, vector<1x16x32xf32>
    %97 = vector.shape_cast %96 : vector<1x16x32xf32> to vector<16x32xf32>
    %98 = vector.shape_cast %95 : vector<16x32xf32> to vector<1x16x32xf32>
    tpu.vector_store %arg15[%c6, %c0_37, %c0_38], %98 {strides = array<i32>} : memref<8x16x64xf32, #tpu.memory_space<vmem>>, vector<1x16x32xf32>,
    %99 = vector.extract_strided_slice %92 {offsets = [0, 1], sizes = [16, 1], strides = [1, 1]} : vector<16x2xf32> to vector<16x1xf32>
    %100 = vector.shape_cast %99 : vector<16x1xf32> to vector<16x1xf32>
    %101 = vector.broadcast %100 : vector<16x1xf32> to vector<16x32xf32>
    %c6_39 = arith.constant 6 : index
    %c0_40 = arith.constant 0 : index
    %c32_41 = arith.constant 32 : index
    %102 = vector.load %arg15[%c6_39, %c0_40, %c32_41] : memref<8x16x64xf32, #tpu.memory_space<vmem>>, vector<1x16x32xf32>
    %103 = vector.shape_cast %102 : vector<1x16x32xf32> to vector<16x32xf32>
    %104 = vector.shape_cast %101 : vector<16x32xf32> to vector<1x16x32xf32>
    tpu.vector_store %arg15[%c6_39, %c0_40, %c32_41], %104 {strides = array<i32>} : memref<8x16x64xf32, #tpu.memory_space<vmem>>, vector<1x16x32xf32>,
    %105 = vector.extract_strided_slice %13 {offsets = [0, 14], sizes = [16, 2], strides = [1, 1]} : vector<16x16xf32> to vector<16x2xf32>
    %106 = vector.extract_strided_slice %105 {offsets = [0, 0], sizes = [16, 1], strides = [1, 1]} : vector<16x2xf32> to vector<16x1xf32>
    %107 = vector.shape_cast %106 : vector<16x1xf32> to vector<16x1xf32>
    %108 = vector.broadcast %107 : vector<16x1xf32> to vector<16x32xf32>
    %c7 = arith.constant 7 : index
    %c0_42 = arith.constant 0 : index
    %c0_43 = arith.constant 0 : index
    %109 = vector.load %arg15[%c7, %c0_42, %c0_43] : memref<8x16x64xf32, #tpu.memory_space<vmem>>, vector<1x16x32xf32>
    %110 = vector.shape_cast %109 : vector<1x16x32xf32> to vector<16x32xf32>
    %111 = vector.shape_cast %108 : vector<16x32xf32> to vector<1x16x32xf32>
    tpu.vector_store %arg15[%c7, %c0_42, %c0_43], %111 {strides = array<i32>} : memref<8x16x64xf32, #tpu.memory_space<vmem>>, vector<1x16x32xf32>,
    %112 = vector.extract_strided_slice %105 {offsets = [0, 1], sizes = [16, 1], strides = [1, 1]} : vector<16x2xf32> to vector<16x1xf32>
    %113 = vector.shape_cast %112 : vector<16x1xf32> to vector<16x1xf32>
    %114 = vector.broadcast %113 : vector<16x1xf32> to vector<16x32xf32>
    %c7_44 = arith.constant 7 : index
    %c0_45 = arith.constant 0 : index
    %c32_46 = arith.constant 32 : index
    %115 = vector.load %arg15[%c7_44, %c0_45, %c32_46] : memref<8x16x64xf32, #tpu.memory_space<vmem>>, vector<1x16x32xf32>
    %116 = vector.shape_cast %115 : vector<1x16x32xf32> to vector<16x32xf32>
    %117 = vector.shape_cast %114 : vector<16x32xf32> to vector<1x16x32xf32>
    tpu.vector_store %arg15[%c7_44, %c0_45, %c32_46], %117 {strides = array<i32>} : memref<8x16x64xf32, #tpu.memory_space<vmem>>, vector<1x16x32xf32>,
    %c0_47 = arith.constant 0 : index
    %c0_48 = arith.constant 0 : index
    %c0_49 = arith.constant 0 : index
    %118 = vector.load %arg3[%c0_47, %c0_48, %c0_49] : memref<2x8x32xf32, #tpu.memory_space<vmem>>, vector<2x8x32xf32>
    %119 = vector.shape_cast %118 : vector<2x8x32xf32> to vector<16x32xf32>
    %c0_50 = arith.constant 0 : index
    %c0_51 = arith.constant 0 : index
    %120 = vector.load %arg7[%c0_50, %c0_51] : memref<32x64xf32, #tpu.memory_space<vmem>>, vector<32x64xf32>
    %cst_52 = arith.constant dense<0.000000e+00> : vector<16x64xf32>
    %121 = tpu.matmul %119, %120, %cst_52 {dimension_numbers = #tpu.dot_dimension_numbers<[1], [0], [0], [1], [0, 0, 1, 1], [], []>, precision = #tpu.contract_precision<fp32>} : vector<16x32xf32>, vector<32x64xf32>, vector<16x64xf32> -> vector<16x64xf32>
    %c0_53 = arith.constant 0 : index
    %c0_54 = arith.constant 0 : index
    %122 = vector.load %arg8[%c0_53, %c0_54] : memref<1x64xf32, #tpu.memory_space<vmem>>, vector<1x64xf32>
    %123 = vector.broadcast %122 : vector<1x64xf32> to vector<16x64xf32>
    %124 = arith.addf %121, %123 : vector<16x64xf32>
    %125 = vector.extract_strided_slice %124 {offsets = [0, 0], sizes = [16, 32], strides = [1, 1]} : vector<16x64xf32> to vector<16x32xf32>
    %126 = arith.negf %125 : vector<16x32xf32>
    %127 = math.exp %126 : vector<16x32xf32>
    %cst_55 = arith.constant 1.000000e+00 : f32
    %128 = vector.broadcast %cst_55 : f32 to vector<16x32xf32>
    %129 = arith.addf %128, %127 : vector<16x32xf32>
    %130 = arith.divf %128, %129 : vector<16x32xf32>
    %131 = vector.extract_strided_slice %124 {offsets = [0, 32], sizes = [16, 32], strides = [1, 1]} : vector<16x64xf32> to vector<16x32xf32>
    %132 = math.tanh %131 : vector<16x32xf32>
    %133 = vector.extract_strided_slice %130 {offsets = [0, 0], sizes = [8, 32], strides = [1, 1]} : vector<16x32xf32> to vector<8x32xf32>
    %c0_56 = arith.constant 0 : index
    %c0_57 = arith.constant 0 : index
    %134 = vector.load %arg16[%c0_56, %c0_57] : memref<8x64xf32, #tpu.memory_space<vmem>>, vector<8x32xf32>
    tpu.vector_store %arg16[%c0_56, %c0_57], %133 {strides = array<i32>} : memref<8x64xf32, #tpu.memory_space<vmem>>, vector<8x32xf32>,
    %135 = vector.extract_strided_slice %132 {offsets = [0, 0], sizes = [8, 32], strides = [1, 1]} : vector<16x32xf32> to vector<8x32xf32>
    %c0_58 = arith.constant 0 : index
    %c0_59 = arith.constant 0 : index
    %136 = vector.load %arg17[%c0_58, %c0_59] : memref<8x64xf32, #tpu.memory_space<vmem>>, vector<8x32xf32>
    tpu.vector_store %arg17[%c0_58, %c0_59], %135 {strides = array<i32>} : memref<8x64xf32, #tpu.memory_space<vmem>>, vector<8x32xf32>,
    %137 = vector.extract_strided_slice %130 {offsets = [8, 0], sizes = [8, 32], strides = [1, 1]} : vector<16x32xf32> to vector<8x32xf32>
    %c0_60 = arith.constant 0 : index
    %c32_61 = arith.constant 32 : index
    %138 = vector.load %arg16[%c0_60, %c32_61] : memref<8x64xf32, #tpu.memory_space<vmem>>, vector<8x32xf32>
    tpu.vector_store %arg16[%c0_60, %c32_61], %137 {strides = array<i32>} : memref<8x64xf32, #tpu.memory_space<vmem>>, vector<8x32xf32>,
    %139 = vector.extract_strided_slice %132 {offsets = [8, 0], sizes = [8, 32], strides = [1, 1]} : vector<16x32xf32> to vector<8x32xf32>
    %c0_62 = arith.constant 0 : index
    %c32_63 = arith.constant 32 : index
    %140 = vector.load %arg17[%c0_62, %c32_63] : memref<8x64xf32, #tpu.memory_space<vmem>>, vector<8x32xf32>
    tpu.vector_store %arg17[%c0_62, %c32_63], %139 {strides = array<i32>} : memref<8x64xf32, #tpu.memory_space<vmem>>, vector<8x32xf32>,
    %c0_64 = arith.constant 0 : index
    %c0_65 = arith.constant 0 : index
    %141 = vector.load %arg5[%c0_64, %c0_65] : memref<16x64xf32, #tpu.memory_space<vmem>>, vector<16x64xf32>
    %c0_66 = arith.constant 0 : index
    %c0_67 = arith.constant 0 : index
    %c0_68 = arith.constant 0 : index
    %142 = vector.load %arg15[%c0_66, %c0_67, %c0_68] : memref<8x16x64xf32, #tpu.memory_space<vmem>>, vector<1x16x64xf32>
    %143 = vector.shape_cast %142 : vector<1x16x64xf32> to vector<16x64xf32>
    %c0_69 = arith.constant 0 : index
    %c0_70 = arith.constant 0 : index
    %144 = vector.load %arg16[%c0_69, %c0_70] : memref<8x64xf32, #tpu.memory_space<vmem>>, vector<1x64xf32>
    %c0_71 = arith.constant 0 : index
    %c0_72 = arith.constant 0 : index
    %145 = vector.load %arg17[%c0_71, %c0_72] : memref<8x64xf32, #tpu.memory_space<vmem>>, vector<1x64xf32>
    %146 = arith.mulf %143, %141 : vector<16x64xf32>
    %cst_73 = arith.constant dense<0.000000e+00> : vector<64xf32>
    %147 = vector.multi_reduction <add>, %146, %cst_73 [0] : vector<16x64xf32> to vector<64xf32>
    %148 = vector.shape_cast %147 : vector<64xf32> to vector<1x64xf32>
    %149 = vector.broadcast %144 : vector<1x64xf32> to vector<16x64xf32>
    %150 = arith.mulf %143, %149 : vector<16x64xf32>
    %cst_74 = arith.constant 1.000000e+00 : f32
    %151 = vector.broadcast %cst_74 : f32 to vector<16x64xf32>
    %152 = arith.subf %151, %150 : vector<16x64xf32>
    %153 = arith.mulf %141, %152 : vector<16x64xf32>
    %154 = vector.broadcast %145 : vector<1x64xf32> to vector<16x64xf32>
    %155 = arith.mulf %143, %154 : vector<16x64xf32>
    %156 = arith.addf %153, %155 : vector<16x64xf32>
    %c1_75 = arith.constant 1 : index
    %c0_76 = arith.constant 0 : index
    %c0_77 = arith.constant 0 : index
    %157 = vector.load %arg15[%c1_75, %c0_76, %c0_77] : memref<8x16x64xf32, #tpu.memory_space<vmem>>, vector<1x16x64xf32>
    %158 = vector.shape_cast %157 : vector<1x16x64xf32> to vector<16x64xf32>
    %c1_78 = arith.constant 1 : index
    %c0_79 = arith.constant 0 : index
    %159 = vector.load %arg16[%c1_78, %c0_79] : memref<8x64xf32, #tpu.memory_space<vmem>>, vector<1x64xf32>
    %c1_80 = arith.constant 1 : index
    %c0_81 = arith.constant 0 : index
    %160 = vector.load %arg17[%c1_80, %c0_81] : memref<8x64xf32, #tpu.memory_space<vmem>>, vector<1x64xf32>
    %161 = arith.mulf %158, %156 : vector<16x64xf32>
    %cst_82 = arith.constant dense<0.000000e+00> : vector<64xf32>
    %162 = vector.multi_reduction <add>, %161, %cst_82 [0] : vector<16x64xf32> to vector<64xf32>
    %163 = vector.shape_cast %162 : vector<64xf32> to vector<1x64xf32>
    %164 = vector.broadcast %159 : vector<1x64xf32> to vector<16x64xf32>
    %165 = arith.mulf %158, %164 : vector<16x64xf32>
    %cst_83 = arith.constant 1.000000e+00 : f32
    %166 = vector.broadcast %cst_83 : f32 to vector<16x64xf32>
    %167 = arith.subf %166, %165 : vector<16x64xf32>
    %168 = arith.mulf %156, %167 : vector<16x64xf32>
    %169 = vector.broadcast %160 : vector<1x64xf32> to vector<16x64xf32>
    %170 = arith.mulf %158, %169 : vector<16x64xf32>
    %171 = arith.addf %168, %170 : vector<16x64xf32>
    %c2_84 = arith.constant 2 : index
    %c0_85 = arith.constant 0 : index
    %c0_86 = arith.constant 0 : index
    %172 = vector.load %arg15[%c2_84, %c0_85, %c0_86] : memref<8x16x64xf32, #tpu.memory_space<vmem>>, vector<1x16x64xf32>
    %173 = vector.shape_cast %172 : vector<1x16x64xf32> to vector<16x64xf32>
    %c2_87 = arith.constant 2 : index
    %c0_88 = arith.constant 0 : index
    %174 = vector.load %arg16[%c2_87, %c0_88] : memref<8x64xf32, #tpu.memory_space<vmem>>, vector<1x64xf32>
    %c2_89 = arith.constant 2 : index
    %c0_90 = arith.constant 0 : index
    %175 = vector.load %arg17[%c2_89, %c0_90] : memref<8x64xf32, #tpu.memory_space<vmem>>, vector<1x64xf32>
    %176 = arith.mulf %173, %171 : vector<16x64xf32>
    %cst_91 = arith.constant dense<0.000000e+00> : vector<64xf32>
    %177 = vector.multi_reduction <add>, %176, %cst_91 [0] : vector<16x64xf32> to vector<64xf32>
    %178 = vector.shape_cast %177 : vector<64xf32> to vector<1x64xf32>
    %179 = vector.broadcast %174 : vector<1x64xf32> to vector<16x64xf32>
    %180 = arith.mulf %173, %179 : vector<16x64xf32>
    %cst_92 = arith.constant 1.000000e+00 : f32
    %181 = vector.broadcast %cst_92 : f32 to vector<16x64xf32>
    %182 = arith.subf %181, %180 : vector<16x64xf32>
    %183 = arith.mulf %171, %182 : vector<16x64xf32>
    %184 = vector.broadcast %175 : vector<1x64xf32> to vector<16x64xf32>
    %185 = arith.mulf %173, %184 : vector<16x64xf32>
    %186 = arith.addf %183, %185 : vector<16x64xf32>
    %c3_93 = arith.constant 3 : index
    %c0_94 = arith.constant 0 : index
    %c0_95 = arith.constant 0 : index
    %187 = vector.load %arg15[%c3_93, %c0_94, %c0_95] : memref<8x16x64xf32, #tpu.memory_space<vmem>>, vector<1x16x64xf32>
    %188 = vector.shape_cast %187 : vector<1x16x64xf32> to vector<16x64xf32>
    %c3_96 = arith.constant 3 : index
    %c0_97 = arith.constant 0 : index
    %189 = vector.load %arg16[%c3_96, %c0_97] : memref<8x64xf32, #tpu.memory_space<vmem>>, vector<1x64xf32>
    %c3_98 = arith.constant 3 : index
    %c0_99 = arith.constant 0 : index
    %190 = vector.load %arg17[%c3_98, %c0_99] : memref<8x64xf32, #tpu.memory_space<vmem>>, vector<1x64xf32>
    %191 = arith.mulf %188, %186 : vector<16x64xf32>
    %cst_100 = arith.constant dense<0.000000e+00> : vector<64xf32>
    %192 = vector.multi_reduction <add>, %191, %cst_100 [0] : vector<16x64xf32> to vector<64xf32>
    %193 = vector.shape_cast %192 : vector<64xf32> to vector<1x64xf32>
    %194 = vector.broadcast %189 : vector<1x64xf32> to vector<16x64xf32>
    %195 = arith.mulf %188, %194 : vector<16x64xf32>
    %cst_101 = arith.constant 1.000000e+00 : f32
    %196 = vector.broadcast %cst_101 : f32 to vector<16x64xf32>
    %197 = arith.subf %196, %195 : vector<16x64xf32>
    %198 = arith.mulf %186, %197 : vector<16x64xf32>
    %199 = vector.broadcast %190 : vector<1x64xf32> to vector<16x64xf32>
    %200 = arith.mulf %188, %199 : vector<16x64xf32>
    %201 = arith.addf %198, %200 : vector<16x64xf32>
    %c4_102 = arith.constant 4 : index
    %c0_103 = arith.constant 0 : index
    %c0_104 = arith.constant 0 : index
    %202 = vector.load %arg15[%c4_102, %c0_103, %c0_104] : memref<8x16x64xf32, #tpu.memory_space<vmem>>, vector<1x16x64xf32>
    %203 = vector.shape_cast %202 : vector<1x16x64xf32> to vector<16x64xf32>
    %c4_105 = arith.constant 4 : index
    %c0_106 = arith.constant 0 : index
    %204 = vector.load %arg16[%c4_105, %c0_106] : memref<8x64xf32, #tpu.memory_space<vmem>>, vector<1x64xf32>
    %c4_107 = arith.constant 4 : index
    %c0_108 = arith.constant 0 : index
    %205 = vector.load %arg17[%c4_107, %c0_108] : memref<8x64xf32, #tpu.memory_space<vmem>>, vector<1x64xf32>
    %206 = arith.mulf %203, %201 : vector<16x64xf32>
    %cst_109 = arith.constant dense<0.000000e+00> : vector<64xf32>
    %207 = vector.multi_reduction <add>, %206, %cst_109 [0] : vector<16x64xf32> to vector<64xf32>
    %208 = vector.shape_cast %207 : vector<64xf32> to vector<1x64xf32>
    %209 = vector.broadcast %204 : vector<1x64xf32> to vector<16x64xf32>
    %210 = arith.mulf %203, %209 : vector<16x64xf32>
    %cst_110 = arith.constant 1.000000e+00 : f32
    %211 = vector.broadcast %cst_110 : f32 to vector<16x64xf32>
    %212 = arith.subf %211, %210 : vector<16x64xf32>
    %213 = arith.mulf %201, %212 : vector<16x64xf32>
    %214 = vector.broadcast %205 : vector<1x64xf32> to vector<16x64xf32>
    %215 = arith.mulf %203, %214 : vector<16x64xf32>
    %216 = arith.addf %213, %215 : vector<16x64xf32>
    %c5_111 = arith.constant 5 : index
    %c0_112 = arith.constant 0 : index
    %c0_113 = arith.constant 0 : index
    %217 = vector.load %arg15[%c5_111, %c0_112, %c0_113] : memref<8x16x64xf32, #tpu.memory_space<vmem>>, vector<1x16x64xf32>
    %218 = vector.shape_cast %217 : vector<1x16x64xf32> to vector<16x64xf32>
    %c5_114 = arith.constant 5 : index
    %c0_115 = arith.constant 0 : index
    %219 = vector.load %arg16[%c5_114, %c0_115] : memref<8x64xf32, #tpu.memory_space<vmem>>, vector<1x64xf32>
    %c5_116 = arith.constant 5 : index
    %c0_117 = arith.constant 0 : index
    %220 = vector.load %arg17[%c5_116, %c0_117] : memref<8x64xf32, #tpu.memory_space<vmem>>, vector<1x64xf32>
    %221 = arith.mulf %218, %216 : vector<16x64xf32>
    %cst_118 = arith.constant dense<0.000000e+00> : vector<64xf32>
    %222 = vector.multi_reduction <add>, %221, %cst_118 [0] : vector<16x64xf32> to vector<64xf32>
    %223 = vector.shape_cast %222 : vector<64xf32> to vector<1x64xf32>
    %224 = vector.broadcast %219 : vector<1x64xf32> to vector<16x64xf32>
    %225 = arith.mulf %218, %224 : vector<16x64xf32>
    %cst_119 = arith.constant 1.000000e+00 : f32
    %226 = vector.broadcast %cst_119 : f32 to vector<16x64xf32>
    %227 = arith.subf %226, %225 : vector<16x64xf32>
    %228 = arith.mulf %216, %227 : vector<16x64xf32>
    %229 = vector.broadcast %220 : vector<1x64xf32> to vector<16x64xf32>
    %230 = arith.mulf %218, %229 : vector<16x64xf32>
    %231 = arith.addf %228, %230 : vector<16x64xf32>
    %c6_120 = arith.constant 6 : index
    %c0_121 = arith.constant 0 : index
    %c0_122 = arith.constant 0 : index
    %232 = vector.load %arg15[%c6_120, %c0_121, %c0_122] : memref<8x16x64xf32, #tpu.memory_space<vmem>>, vector<1x16x64xf32>
    %233 = vector.shape_cast %232 : vector<1x16x64xf32> to vector<16x64xf32>
    %c6_123 = arith.constant 6 : index
    %c0_124 = arith.constant 0 : index
    %234 = vector.load %arg16[%c6_123, %c0_124] : memref<8x64xf32, #tpu.memory_space<vmem>>, vector<1x64xf32>
    %c6_125 = arith.constant 6 : index
    %c0_126 = arith.constant 0 : index
    %235 = vector.load %arg17[%c6_125, %c0_126] : memref<8x64xf32, #tpu.memory_space<vmem>>, vector<1x64xf32>
    %236 = arith.mulf %233, %231 : vector<16x64xf32>
    %cst_127 = arith.constant dense<0.000000e+00> : vector<64xf32>
    %237 = vector.multi_reduction <add>, %236, %cst_127 [0] : vector<16x64xf32> to vector<64xf32>
    %238 = vector.shape_cast %237 : vector<64xf32> to vector<1x64xf32>
    %239 = vector.broadcast %234 : vector<1x64xf32> to vector<16x64xf32>
    %240 = arith.mulf %233, %239 : vector<16x64xf32>
    %cst_128 = arith.constant 1.000000e+00 : f32
    %241 = vector.broadcast %cst_128 : f32 to vector<16x64xf32>
    %242 = arith.subf %241, %240 : vector<16x64xf32>
    %243 = arith.mulf %231, %242 : vector<16x64xf32>
    %244 = vector.broadcast %235 : vector<1x64xf32> to vector<16x64xf32>
    %245 = arith.mulf %233, %244 : vector<16x64xf32>
    %246 = arith.addf %243, %245 : vector<16x64xf32>
    %c7_129 = arith.constant 7 : index
    %c0_130 = arith.constant 0 : index
    %c0_131 = arith.constant 0 : index
    %247 = vector.load %arg15[%c7_129, %c0_130, %c0_131] : memref<8x16x64xf32, #tpu.memory_space<vmem>>, vector<1x16x64xf32>
    %248 = vector.shape_cast %247 : vector<1x16x64xf32> to vector<16x64xf32>
    %249 = arith.mulf %248, %246 : vector<16x64xf32>
    %cst_132 = arith.constant dense<0.000000e+00> : vector<64xf32>
    %250 = vector.multi_reduction <add>, %249, %cst_132 [0] : vector<16x64xf32> to vector<64xf32>
    %251 = vector.shape_cast %250 : vector<64xf32> to vector<1x64xf32>
    %252 = tpu.concatenate %148, %163, %178, %193, %208, %223, %238, %251 in 0 : vector<1x64xf32>, vector<1x64xf32>, vector<1x64xf32>, vector<1x64xf32>, vector<1x64xf32>, vector<1x64xf32>, vector<1x64xf32>, vector<1x64xf32> -> vector<8x64xf32>
    %253 = vector.extract_strided_slice %252 {offsets = [0, 0], sizes = [8, 32], strides = [1, 1]} : vector<8x64xf32> to vector<8x32xf32>
    %254 = vector.extract_strided_slice %252 {offsets = [0, 32], sizes = [8, 32], strides = [1, 1]} : vector<8x64xf32> to vector<8x32xf32>
    %255 = tpu.concatenate %253, %254 in 0 : vector<8x32xf32>, vector<8x32xf32> -> vector<16x32xf32>
    %c0_133 = arith.constant 0 : index
    %c0_134 = arith.constant 0 : index
    %c0_135 = arith.constant 0 : index
    %256 = vector.load %arg2[%c0_133, %c0_134, %c0_135] : memref<2x8x32xf32, #tpu.memory_space<vmem>>, vector<2x8x32xf32>
    %257 = vector.shape_cast %256 : vector<2x8x32xf32> to vector<16x32xf32>
    %c0_136 = arith.constant 0 : index
    %c0_137 = arith.constant 0 : index
    %258 = vector.load %arg9[%c0_136, %c0_137] : memref<32x32xf32, #tpu.memory_space<vmem>>, vector<32x32xf32>
    %cst_138 = arith.constant dense<0.000000e+00> : vector<16x32xf32>
    %259 = tpu.matmul %255, %258, %cst_138 {dimension_numbers = #tpu.dot_dimension_numbers<[1], [0], [0], [1], [0, 0, 1, 1], [], []>, precision = #tpu.contract_precision<fp32>} : vector<16x32xf32>, vector<32x32xf32>, vector<16x32xf32> -> vector<16x32xf32>
    %c0_139 = arith.constant 0 : index
    %c0_140 = arith.constant 0 : index
    %260 = vector.load %arg10[%c0_139, %c0_140] : memref<32x32xf32, #tpu.memory_space<vmem>>, vector<32x32xf32>
    %cst_141 = arith.constant dense<0.000000e+00> : vector<16x32xf32>
    %261 = tpu.matmul %257, %260, %cst_141 {dimension_numbers = #tpu.dot_dimension_numbers<[1], [0], [0], [1], [0, 0, 1, 1], [], []>, precision = #tpu.contract_precision<fp32>} : vector<16x32xf32>, vector<32x32xf32>, vector<16x32xf32> -> vector<16x32xf32>
    %262 = arith.addf %259, %261 : vector<16x32xf32>
    %c0_142 = arith.constant 0 : index
    %c0_143 = arith.constant 0 : index
    %263 = vector.load %arg11[%c0_142, %c0_143] : memref<1x32xf32, #tpu.memory_space<vmem>>, vector<1x32xf32>
    %264 = vector.broadcast %263 : vector<1x32xf32> to vector<16x32xf32>
    %265 = arith.addf %262, %264 : vector<16x32xf32>
    %266 = math.tanh %265 : vector<16x32xf32>
    %c0_144 = arith.constant 0 : index
    %c0_145 = arith.constant 0 : index
    %267 = vector.load %arg12[%c0_144, %c0_145] : memref<32x128xf32, #tpu.memory_space<vmem>>, vector<32x128xf32>
    %cst_146 = arith.constant dense<0.000000e+00> : vector<16x128xf32>
    %268 = tpu.matmul %266, %267, %cst_146 {dimension_numbers = #tpu.dot_dimension_numbers<[1], [0], [0], [1], [0, 0, 1, 1], [], []>, precision = #tpu.contract_precision<fp32>} : vector<16x32xf32>, vector<32x128xf32>, vector<16x128xf32> -> vector<16x128xf32>
    %c0_147 = arith.constant 0 : index
    %c0_148 = arith.constant 0 : index
    %269 = vector.load %arg13[%c0_147, %c0_148] : memref<1x128xf32, #tpu.memory_space<vmem>>, vector<1x128xf32>
    %270 = vector.broadcast %269 : vector<1x128xf32> to vector<16x128xf32>
    %271 = arith.addf %268, %270 : vector<16x128xf32>
    %272 = arith.negf %271 : vector<16x128xf32>
    %273 = math.exp %272 : vector<16x128xf32>
    %cst_149 = arith.constant 1.000000e+00 : f32
    %274 = vector.broadcast %cst_149 : f32 to vector<16x128xf32>
    %275 = arith.addf %274, %273 : vector<16x128xf32>
    %276 = arith.divf %274, %275 : vector<16x128xf32>
    %c0_150 = arith.constant 0 : index
    %c0_151 = arith.constant 0 : index
    %277 = vector.load %arg14[%c0_150, %c0_151] : memref<16x128xf32, #tpu.memory_space<vmem>>, vector<16x128xf32>
    tpu.vector_store %arg14[%c0_150, %c0_151], %276 {strides = array<i32>} : memref<16x128xf32, #tpu.memory_space<vmem>>, vector<16x128xf32>,
    return
  }
  func.func @transform_0(%arg0: i32) -> (i32, i32, i32, i32) {
    %c0_i32 = arith.constant 0 : i32
    %c0_i32_0 = arith.constant 0 : i32
    %c0_i32_1 = arith.constant 0 : i32
    %c0_i32_2 = arith.constant 0 : i32
    return %arg0, %c0_i32, %c0_i32_0, %c0_i32_1 : i32, i32, i32, i32
  }
  func.func @transform_1(%arg0: i32) -> (i32, i32, i32) {
    %c0_i32 = arith.constant 0 : i32
    %c0_i32_0 = arith.constant 0 : i32
    %c0_i32_1 = arith.constant 0 : i32
    return %arg0, %c0_i32, %c0_i32_0 : i32, i32, i32
  }
  func.func @transform_2(%arg0: i32) -> (i32, i32, i32) {
    %c0_i32 = arith.constant 0 : i32
    %c0_i32_0 = arith.constant 0 : i32
    %c0_i32_1 = arith.constant 0 : i32
    return %arg0, %c0_i32, %c0_i32_0 : i32, i32, i32
  }
  func.func @transform_3(%arg0: i32) -> (i32, i32) {
    %c0_i32 = arith.constant 0 : i32
    %c0_i32_0 = arith.constant 0 : i32
    %c0_i32_1 = arith.constant 0 : i32
    return %c0_i32, %c0_i32_0 : i32, i32
  }
  func.func @transform_4(%arg0: i32) -> (i32, i32) {
    %c0_i32 = arith.constant 0 : i32
    %c0_i32_0 = arith.constant 0 : i32
    %c0_i32_1 = arith.constant 0 : i32
    return %c0_i32, %c0_i32_0 : i32, i32
  }
  func.func @transform_5(%arg0: i32) -> (i32, i32) {
    %c0_i32 = arith.constant 0 : i32
    %c0_i32_0 = arith.constant 0 : i32
    %c0_i32_1 = arith.constant 0 : i32
    return %c0_i32, %c0_i32_0 : i32, i32
  }
  func.func @transform_6(%arg0: i32) -> (i32, i32) {
    %c0_i32 = arith.constant 0 : i32
    %c0_i32_0 = arith.constant 0 : i32
    %c0_i32_1 = arith.constant 0 : i32
    return %c0_i32, %c0_i32_0 : i32, i32
  }
  func.func @transform_7(%arg0: i32) -> (i32, i32) {
    %c0_i32 = arith.constant 0 : i32
    %c0_i32_0 = arith.constant 0 : i32
    %c0_i32_1 = arith.constant 0 : i32
    return %c0_i32, %c0_i32_0 : i32, i32
  }
  func.func @transform_8(%arg0: i32) -> (i32, i32) {
    %c0_i32 = arith.constant 0 : i32
    %c0_i32_0 = arith.constant 0 : i32
    %c0_i32_1 = arith.constant 0 : i32
    return %c0_i32, %c0_i32_0 : i32, i32
  }
  func.func @transform_9(%arg0: i32) -> (i32, i32) {
    %c0_i32 = arith.constant 0 : i32
    %c0_i32_0 = arith.constant 0 : i32
    %c0_i32_1 = arith.constant 0 : i32
    return %c0_i32, %c0_i32_0 : i32, i32
  }
  func.func @transform_10(%arg0: i32) -> (i32, i32) {
    %c0_i32 = arith.constant 0 : i32
    %c0_i32_0 = arith.constant 0 : i32
    %c0_i32_1 = arith.constant 0 : i32
    return %c0_i32, %c0_i32_0 : i32, i32
  }
  func.func @transform_11(%arg0: i32) -> (i32, i32) {
    %c0_i32 = arith.constant 0 : i32
    %c0_i32_0 = arith.constant 0 : i32
    %c0_i32_1 = arith.constant 0 : i32
    return %c0_i32, %c0_i32_0 : i32, i32
  }
  func.func @transform_12(%arg0: i32) -> (i32, i32) {
    %c0_i32 = arith.constant 0 : i32
    %c0_i32_0 = arith.constant 0 : i32
    %c0_i32_1 = arith.constant 0 : i32
    return %c0_i32, %c0_i32_0 : i32, i32
  }
  func.func @transform_13(%arg0: i32) -> (i32, i32) {
    %c0_i32 = arith.constant 0 : i32
    %c0_i32_0 = arith.constant 0 : i32
    return %arg0, %c0_i32 : i32, i32
  }
}

</mosaic_0001>

<bundles_post_ra>
// kernel: tpu_custom_call.1
= control target key start
LH: loop header
LB: loop body
LE: loop exit
PB: predicated region body
PF: predicated region fallthrough
CT: control target
= control target key end

     0   :  { %s3861_s0 = inlined_call_operand.hbm [shape: f32[2,8,2,32], index: 0, kind: input, shape index: {}]   ;;  %s3862_s1 = inlined_call_operand.hbm [shape: f32[4,8,32], index: 1, kind: input, shape index: {}]   ;;  %s3863_s2 = inlined_call_operand.hbm [shape: f32[4,8,32], index: 2, kind: input, shape index: {}]   ;;  %s3864_s3 = inlined_call_operand.hbm [shape: f32[16,32], index: 3, kind: input, shape index: {}]   ;;  %s3865_s4 = inlined_call_operand.hbm [shape: f32[16,64], index: 4, kind: input, shape index: {}]   ;;  %s3866_s5 = inlined_call_operand.vmem [shape: f32[2,64], index: 5, kind: input, shape index: {}]   ;;  %s3867_s6 = inlined_call_operand.hbm [shape: f32[32,64], index: 6, kind: input, shape index: {}]   ;;  %s3868_s7 = inlined_call_operand.vmem [shape: f32[1,64], index: 7, kind: input, shape index: {}]   ;;  %s3869_s8 = inlined_call_operand.hbm [shape: f32[32,32], index: 8, kind: input, shape index: {}]   ;;  %s3870_s9 = inlined_call_operand.hbm [shape: f32[32,32], index: 9, kind: input, shape index: {}]   ;;  %s3871_s10 = inlined_call_operand.vmem [shape: f32[1,32], index: 10, kind: input, shape index: {}]   ;;  %s3872_s11 = inlined_call_operand.hbm [shape: f32[32,128], index: 11, kind: input, shape index: {}]   ;;  %s3873_s12 = inlined_call_operand.vmem [shape: f32[1,128], index: 12, kind: input, shape index: {}]   ;;  %s3874_s13 = inlined_call_operand.hbm [shape: f32[32,128], index: 13, kind: output, shape index: {}]  }
   0x1   :  { %3889 = sst [smem:[#allocation33_spill]] %s3862_s1 }
   0x2   :  { %3890 = sst [smem:[#allocation34_spill]] %s3864_s3 }
   0x3   :  { %3891 = sst [smem:[#allocation35_spill]] %s3865_s4 }
   0x4   :  { %3892 = sst [smem:[#allocation36_spill]] %s3867_s6 }
   0x5   :  { %3893 = sst [smem:[#allocation37_spill]] %s3869_s8 }
   0x6   :  { %3894 = sst [smem:[#allocation38_spill]] %s3870_s9 }
   0x7   :  { %3895 = sst [smem:[#allocation39_spill]] %s3873_s12 }
   0x8   :  { %3896 = sst [smem:[#allocation40_spill]] %s3874_s13 }
   0x9   :  { %18 = vsyncpa [#allocation6], 0 }
   0xa   :  { %20 = vsyncpa [#allocation6 + $0x1], 0 }
   0xb   :  { %21 = vsyncpa [#allocation9], 0 }
   0xc   :  { %23 = vsyncpa [#allocation9 + $0x1], 0 }
   0xd   :  { %24 = vsyncpa [#allocation12], 0 }
   0xe   :  { %25 = vsyncpa [#allocation15], 0 }
   0xf   :  { %26 = vsyncpa [#allocation18], 0 }
  0x10   :  { %27 = vsyncpa [#allocation7], 0 }
  0x11   :  { %29 = vsyncpa [#allocation7 + $0x1], 0  ;;  %s3223_s24 = smov 0   ;;  %s3225_s25 = smov 0  }
  0x12   :  { %s3227_s26 = smov 0   ;;  %s3229_s27 = smov 0  }
  0x13 LB: > { %3897 = sst [smem:[#allocation27_spill]] %s3109_s24  ;;  %s3247_s14 = sadd.s32 4294967295, %s3121_s27   ;;  %s3121_s27 = sphi %s3229_s27, %s3931_s27   ;;  %s3117_s26 = sphi %s3227_s26, %s3935_s26   ;;  %s3113_s25 = sphi %s3225_s25, %s3934_s25   ;;  %s3109_s24 = sphi %s3223_s24, %s3933_s24  }
  0x14   : > { %3898 = sst [smem:[#allocation28_spill]] %s3121_s27  ;;  %p2504_p0 = scmp.ge.s32.totalorder %s3121_s27, 1 }
  0x15   : > { %s3899_s3 = sld [smem:[#allocation34_spill]]  ;;  %p3888_p1 = scmp.eq.s32.totalorder %s3247_s14, 0 }
  0x16   : > { %p354_p2 = scmp.lt.s32.totalorder %s3121_s27, 3  ;;  %s3123_s16 = smov [#allocation11]  }
  0x17   : > { %s367_s17 = sshll.u32 %s3123_s16, 4  ;;  %s3901_s6 = sld [smem:[#allocation36_spill]]  ;;  %s368_s17 = int_to_ptr.vmem [resolvable:$true] %s367_s17 }
  0x18   : > { %p3252_p3 = pnand %p2504_p0, %p354_p2  ;;  %s3903_s9 = sld [smem:[#allocation38_spill]] }
  0x19   : > { %s3124_s28 = smov [#allocation14]   ;;  %s3875_s16 = smov 128  }
  0x1a   : > { %p2581_p4 = pneg %p3252_p3  ;;  %s398_s29 = sshll.u32 %s3124_s28, 4  ;;  %s399_s29 = int_to_ptr.vmem [resolvable:$true] %s398_s29 }
  0x1b   : > { %s365_s30 = sshll.u32 %s3899_s3, 4  ;;  %s3877_s18 = smov 8   ;;  %s366_s30 = int_to_ptr.hbm [resolvable:$true] %s365_s30 }
  0x1c   : > { %p3264_p6 = pnand %p2581_p4, %p3888_p1  ;;  %s3127_s19 = smov [#allocation17]  }
  0x1d   : > { %s396_s20 = sshll.u32 %s3901_s6, 4  ;;  %s429_s5 = sshll.u32 %s3127_s19, 4  ;;  %s397_s20 = int_to_ptr.hbm [resolvable:$true] %s396_s20  ;;  %s430_s5 = int_to_ptr.vmem [resolvable:$true] %s429_s5 }
  0x1e   : > { %s427_s23 = sshll.u32 %s3903_s9, 4  ;;  %s42_s22 = sadd.s32 1, %s3117_s26  ;;  %s428_s23 = int_to_ptr.hbm [resolvable:$true] %s427_s23 }
  0x1f   : > { %2584 = dma.hbm_to_vmem [thread:$0]  (!%p3264_p6), %s366_s30, 256, %s368_s17, [#allocation12], %s3875_s16, %s3875_s16, %s3877_s18  }
  0x20   : > { %2590 = dma.hbm_to_vmem [thread:$0]  (!%p3264_p6), %s397_s20, 512, %s399_s29, [#allocation15], %s3875_s16, %s3875_s16, %s3877_s18  }
  0x21   : > { %2596 = dma.hbm_to_vmem [thread:$0]  (!%p3264_p6), %s428_s23, 512, %s430_s5, [#allocation18], %s3875_s16, %s3875_s16, %s3877_s18  }
  0x22   : > { %s2503_s30 = sadd.s32 4294967294, %s3121_s27   ;;  %s3288_s17 = sadd.s32 1, %s3121_s27  }
  0x23   : > { %3904 = sst [smem:[#allocation29_spill]] %s3288_s17  ;;  %s39_s28 = ssub.s32 %s3121_s27, %s3288_s17 }
  0x24   : > { %p49_p7 = scmp.ne.s32.totalorder %s3117_s26, %s3113_s25  ;;  %p40_p8 = scmp.eq.s32.totalorder %s39_s28, 0 }
  0x25   : > { %p50_p9 = scmp.eq.s32.totalorder %s3121_s27, 0  ;;  %p55_p10 = scmp.ne.s32.totalorder %s3113_s25, %s3109_s24 }
  0x26   : > { %p341_p11 = scmp.eq.s32.totalorder %s3247_s14, 1  ;;  %p347_p2 = scmp.eq.s32.totalorder %s2503_s30, 1 }
  0x27   : > { %s3300_s20 = scalar_select %p40_p8, %s3117_s26, %s42_s22  }
  0x28   : > { %p51_p12 = por %p50_p9, %p49_p7  ;;  %p3304_p13 = por %p3888_p1, %p55_p10 }
  0x29   : > { %3905 = sst [smem:[#allocation30_spill]] %s3300_s20  ;;  %p3308_p0 = por %p341_p11, %p49_p7 }
  0x2a   : > { %p2620_p4 = scmp.lt.s32.totalorder %s3121_s27, 2  ;;  %s3881_s19 = sand.u32 1, %s3117_s26  }
  0x2b   : > { %s3907_s29 = scalar_select %p3308_p0, 1, 0 }
  0x2c   : > { %p3314_p5 = por %p347_p2, %p55_p10  ;;  %s3320_s22 = sshll.u32 %s3881_s19, 4 }
  0x2d   : > { %3908 = sst [smem:[#allocation31_spill]] %s3907_s29  ;;  %s3323_s28 = sshll.u32 %s3121_s27, 4 }
  0x2e   : > { %s3909_s5 = scalar_select %p3314_p5, 1, 0 }
  0x2f   : > { %p3325_p8 = pnand %p2620_p4, %p51_p12  ;;  %s485_s30 = sand.u32 1, %s3121_s27  }
  0x30   : > { %3910 = sst [smem:[#allocation32_spill]] %s3909_s5  ;;  %s489_s9 = scalar_lea.vmem [#allocation8], %s3320_s22 }
  0x31   : > { %s3912_s1 = sld [smem:[#allocation33_spill]]  ;;  %s497_s20 = sshll.u32 %s489_s9, 4  ;;  %s498_s20 = int_to_ptr.vmem [resolvable:$true] %s497_s20 }
  0x32   : > { %s3913_s4 = sld [smem:[#allocation35_spill]]  ;;  %s3338_s29 = scalar_lea.sflag [#allocation9], %s485_s30 }
  0x33   : > { %p2863_p9 = pneg %p3325_p8 }
  0x37   : > { %s494_s6 = scalar_lea.hbm %s3912_s1, %s3323_s28  ;;  %s2866_s9 = scalar_lea.hbm %s3912_s1, 32 }
  0x38   : > { %s495_s17 = sshll.u32 %s494_s6, 4  ;;  %s379_s24 = sshll.u32 %s3913_s4, 4  ;;  %s496_s17 = int_to_ptr.hbm [resolvable:$true] %s495_s17  ;;  %s380_s24 = int_to_ptr.hbm [resolvable:$true] %s379_s24 }
  0x39   : > { %s2859_s13 = sshra.s32 %s496_s17, 4  ;;  %s2860_s13 = int_to_ptr.hbm [resolvable:$true] %s2859_s13 }
  0x3a   : > { %s2861_s12 = scalar_lea.hbm %s2860_s13, 16  ;;  %p2867_p12 = scmp.lt.s32.totalorder %s2860_s13, %s3912_s1 }
  0x3b   : > { %p2862_p7 = scmp.ne.s32.totalorder %s2860_s13, %s2861_s12  ;;  %p2868_p2 = scmp.lt.s32.totalorder %s2866_s9, %s2861_s12 }
  0x3d   : > { %p2864_p10 = pnand %p2863_p9, %p2862_p7  ;;  %p2869_p4 = por %p2868_p2, %p2867_p12 }
  0x3f   : > { %p2865_p11 = pneg %p2864_p10 }
  0x41   : > { %p2870_p1 = pnand %p2869_p4, %p2865_p11 }
  0x43   : > { %2873 = shalt.err (!%p2870_p1)
}
  0x44   : > { %s3914_s19 = smov 8   ;;  %s3915_s5 = smov 128  }
  0x45   : > { %2606 = dma.hbm_to_vmem [thread:$0]  (!%p3325_p8), %s496_s17, 256, %s498_s20, %s3338_s29, %s3915_s5, %s3915_s5, %s3914_s19  }
  0x46   : > { %s3128_s30 = smov [#allocation13]   ;;  %s3916_s8 = sld [smem:[#allocation37_spill]] }
  0x47   : > { %s381_s3 = sshll.u32 %s3128_s30, 4  ;;  %s444_s17 = sshll.u32 %s3872_s11, 4  ;;  %s382_s3 = int_to_ptr.vmem [resolvable:$true] %s381_s3  ;;  %s445_s17 = int_to_ptr.hbm [resolvable:$true] %s444_s17 }
  0x48   : > { %2587 = dma.hbm_to_vmem [thread:$0]  (!%p3264_p6), %s380_s24, 256, %s382_s3, [#allocation12], %s3915_s5, %s3915_s5, %s3914_s19  }
  0x49   : > { %s3129_s20 = smov [#allocation16]   ;;  %s3130_s30 = smov [#allocation19]  }
  0x4a   : > { %s415_s18 = sshll.u32 %s3129_s20, 4  ;;  %s446_s27 = sshll.u32 %s3130_s30, 4  ;;  %s416_s18 = int_to_ptr.vmem [resolvable:$true] %s415_s18  ;;  %s447_s27 = int_to_ptr.vmem [resolvable:$true] %s446_s27 }
  0x4b   : > { %2599 = dma.hbm_to_vmem [thread:$0]  (!%p3264_p6), %s445_s17, 512, %s447_s27, [#allocation18], %s3915_s5, %s3915_s5, %s3914_s19  }
  0x4c   : > { %s413_s12 = sshll.u32 %s3916_s8, 4  ;;  %s472_s13 = scalar_lea.hbm %s3861_s0, %s3323_s28  ;;  %s414_s12 = int_to_ptr.hbm [resolvable:$true] %s413_s12 }
  0x4d   : > { %2593 = dma.hbm_to_vmem [thread:$0]  (!%p3264_p6), %s414_s12, 512, %s416_s18, [#allocation15], %s3915_s5, %s3915_s5, %s3914_s19  }
  0x4e   : > { %s467_s6 = scalar_lea.vmem [#allocation5], %s3320_s22  ;;  %s473_s20 = sshll.u32 %s472_s13, 4  ;;  %s474_s20 = int_to_ptr.hbm [resolvable:$true] %s473_s20 }
  0x4f   : > { %s475_s9 = sshll.u32 %s467_s6, 4  ;;  %s3917_s1 = sand.u32 1, %s3117_s26   ;;  %s476_s9 = int_to_ptr.vmem [resolvable:$true] %s475_s9 }
  0x50   : > { %s464_s12 = scalar_lea.sflag [#allocation6], %s3917_s1  ;;  %s2979_s18 = sshra.s32 %s474_s20, 4  ;;  %s2980_s18 = int_to_ptr.hbm [resolvable:$true] %s2979_s18 }
  0x51   : > { %s2981_s30 = scalar_lea.hbm %s2980_s18, 16  ;;  %s2986_s27 = scalar_lea.hbm %s3861_s0, 32 }
  0x52   : > { %p2982_p1 = scmp.ne.s32.totalorder %s2980_s18, %s2981_s30  ;;  %p2987_p6 = scmp.lt.s32.totalorder %s2980_s18, %s3861_s0 }
  0x53   : > { %p2988_p11 = scmp.lt.s32.totalorder %s2986_s27, %s2981_s30 }
  0x54   : > { %p2984_p7 = pnand %p2982_p1, %p2863_p9 }
  0x55   : > { %p2989_p12 = por %p2988_p11, %p2987_p6 }
  0x56   : > { %p2985_p10 = pneg %p2984_p7 }
  0x58   : > { %p2990_p2 = pnand %p2989_p12, %p2985_p10 }
  0x5a   : > { %2993 = shalt.err (!%p2990_p2)
}
  0x5b   : > { %s3131_s1 = smov 32   ;;  %s3132_s13 = smov 2  }
  0x5c   : > { %2603 = dma.hbm_to_vmem [thread:$0]  (!%p3325_p8), %s474_s20, 256, %s476_s9, %s464_s12, %s3131_s1, %s3131_s1, %s3132_s13  }
  0x5d   : > { %s516_s21 = scalar_lea.hbm %s3863_s2, %s3323_s28  ;;  %s511_s17 = scalar_lea.vmem [#allocation10], %s3320_s22 }
  0x5e   : > { %s519_s8 = sshll.u32 %s511_s17, 4  ;;  %s517_s24 = sshll.u32 %s516_s21, 4  ;;  %s520_s8 = int_to_ptr.vmem [resolvable:$true] %s519_s8  ;;  %s518_s24 = int_to_ptr.hbm [resolvable:$true] %s517_s24 }
  0x5f   : > { %s3009_s18 = sshra.s32 %s518_s24, 4  ;;  %s3016_s9 = scalar_lea.hbm %s3863_s2, 32  ;;  %s3010_s18 = int_to_ptr.hbm [resolvable:$true] %s3009_s18 }
  0x60   : > { %s3011_s30 = scalar_lea.hbm %s3010_s18, 16  ;;  %p3017_p10 = scmp.lt.s32.totalorder %s3010_s18, %s3863_s2 }
  0x61   : > { %p3012_p4 = scmp.ne.s32.totalorder %s3010_s18, %s3011_s30  ;;  %p3018_p6 = scmp.lt.s32.totalorder %s3016_s9, %s3011_s30 }
  0x63   : > { %p3014_p1 = pnand %p3012_p4, %p2863_p9  ;;  %p3019_p11 = por %p3018_p6, %p3017_p10 }
  0x65   : > { %p3015_p7 = pneg %p3014_p1 }
  0x67   : > { %p3020_p12 = pnand %p3019_p11, %p3015_p7 }
  0x69   : > { %3023 = shalt.err (!%p3020_p12)
}
  0x6a   : > { %2609 = dma.hbm_to_vmem [thread:$0]  (!%p3325_p8), %s518_s24, 256, %s520_s8, %s3338_s29, %s3915_s5, %s3915_s5, %s3914_s19  }
  0x6b   : > { %531 = sbr.rel (%p3252_p3) target bundleno = 1094 (0x446), region = 72  ;;  %s3419_s22 = sand.u32 (!%p3252_p3), 1, %s3113_s25  }
  0x6c   : > { %s3422_s28 = sshll.u32 (!%p3252_p3), %s3419_s22, 4  ;;  %s534_s12 = scalar_lea.sflag (!%p3252_p3), [#allocation6], %s3419_s22 }
  0x6d   : > { %s3426_s1 = scalar_lea.vmem (!%p3252_p3), [#allocation5], %s3422_s28 }
  0x70   : > { %3084 = dma.done.wait (%p3304_p13), %s534_s12, 256  }
  0x71   : > { %3086 = vsyncadd (%p3304_p13), %s534_s12, 4294967040  ;;  %s543_s8 = sand.u32 1, %s3247_s14   ;;  %s547_s16 = scalar_lea.vmem [#allocation8], %s3422_s28 }
  0x72   : > { %s544_s15 = scalar_lea.sflag [#allocation9], %s543_s8 }
  0x73   : > { %3088 = dma.done.wait (%p3304_p13), %s544_s15, 512  }
  0x74   : > { %3090 = vsyncadd (%p3304_p13), %s544_s15, 4294966784  ;;  %s557_s29 = scalar_lea.vmem [#allocation10], %s3422_s28  ;;  %p3918_p3 = scmp.eq.s32.totalorder %s3247_s14, 0 }
  0x76   : > { %3092 = dma.done.wait (%p3918_p3), [#allocation12], 512   ;;  %p3919_p8 = pmov %p3918_p3 }
  0x77   : > { %p3920_p9 = pmov %p3918_p3 }
  0x78   : > { %3094 = vsyncadd (%p3919_p8), [#allocation12], 4294966784 }
  0x79   : > { %3096 = dma.done.wait (%p3920_p9), [#allocation15], 1024   ;;  %p3921_p2 = pmov %p3918_p3 }
  0x7b   : > { %3098 = vsyncadd (%p3921_p2), [#allocation15], 4294966272  ;;  %p3922_p4 = pmov %p3921_p2 }
  0x7c   : > { %p3923_p1 = pmov %p3921_p2 }
  0x7d   : > { %3100 = dma.done.wait (%p3922_p4), [#allocation18], 1024  }
  0x7e   : > { %3102 = vsyncadd (%p3923_p1), [#allocation18], 4294966272  ;;  %v648_v0 = vld [vmem:[%s3426_s1 + $0x8] sm:$0x3]  ;;  %v649_v1 = vld [vmem:[%s3426_s1 + $0xa] sm:$0x3] }
  0x7f   : > { %v650_v2 = vld [vmem:[%s3426_s1 + $0xc] sm:$0x3]  ;;  %v651_v3 = vld [vmem:[%s3426_s1 + $0xe] sm:$0x3]  ;;  %670 = vst [vmem:[#allocation1 + $0x20] ss:$4 sm:$0xff] %v648_v0 }
  0x80   : > { %vm679_vm0 = vcmask 261120   ;;  %672 = vst [vmem:[#allocation1 + $0x21] ss:$4 sm:$0xff] %v649_v1  ;;  %v644_v4 = vld [vmem:[%s3426_s1] sm:$0x3]  ;;  %v653_v6 = vld [vmem:[#allocation11 + $0x8] sm:$0xff] }
  0x81   : > { %674 = vst [vmem:[#allocation1 + $0x22] ss:$4 sm:$0xff] %v650_v2  ;;  %v645_v5 = vld [vmem:[%s3426_s1 + $0x2] sm:$0x3]  ;;  %v646_v8 = vld [vmem:[%s3426_s1 + $0x4] sm:$0x3] }
  0x82   : > { %v652_v7 = vld [vmem:[#allocation11] sm:$0xff]  ;;  %676 = vst [vmem:[#allocation1 + $0x23] ss:$4 sm:$0xff] %v651_v3  ;;  %v684_v9 = vsel %vm679_vm0, %v653_v6, 0  ;;  %v1083_v18 = vld [vmem:[#allocation14 + $0x18] sm:$0xff]  ;;  %v1082_v21 = vld [vmem:[#allocation14 + $0x10] sm:$0xff] }
  0x83   : > { %v681_v10 = vsel %vm679_vm0, %v652_v7, 0  ;;  %v647_v11 = vld [vmem:[%s3426_s1 + $0x6] sm:$0x3]  ;;  %662 = vst [vmem:[#allocation1] ss:$4 sm:$0xff] %v644_v4  ;;  %v3461_v12 = vand.u32 4294901760, %v684_v9 }
  0x84   : > { %v3463_v13 = vand.u32 4294901760, %v681_v10  ;;  %664 = vst [vmem:[#allocation1 + $0x1] ss:$4 sm:$0xff] %v645_v5  ;;  %v3474_v23 = vand.u32 4294901760, %v1083_v18  ;;  %v1081_v26 = vld [vmem:[#allocation14 + $0x8] sm:$0xff]  ;;  %v3482_v29 = vand.u32 4294901760, %v1082_v21 }
  0x85   : > { %666 = vst [vmem:[#allocation1 + $0x2] ss:$4 sm:$0xff] %v646_v8  ;;  %v3466_v14 = vsub.f32 %v684_v9, %v3461_v12  ;;  %v1080_v31 = vld [vmem:[#allocation14] sm:$0xff]  ;;  %v3488_v35 = vand.u32 4294901760, %v1081_v26  ;;  %v1079_v57 = vld [vmem:[%s557_s29 + $0x8] sm:$0xff]  ;;  %vm880_vm1 = vcmask 130048  }
  0x86   : > { %668 = vst [vmem:[#allocation1 + $0x3] ss:$4 sm:$0xff] %v647_v11  ;;  %v3469_v15 = vsub.f32 %v681_v10, %v3463_v13  ;;  %v3486_v34 = vsub.f32 %v1083_v18, %v3474_v23  ;;  %v3491_v40 = vsub.f32 %v1082_v21, %v3482_v29  ;;  %v3493_v41 = vand.u32 4294901760, %v1080_v31  ;;  %v1078_v42 = vld [vmem:[%s557_s29] sm:$0xff]  ;;  %s3135_s5 = smov 96   ;;  %s3142_s13 = smov 32  }
  0x87   : > { %v718_v16 = vand.u32 4294901760, %v3466_v14  ;;  %v3499_v46 = vsub.f32 %v1081_v26, %v3488_v35  ;;  %v1089_v49 = vsel %vm679_vm0, %v1078_v42, 0  ;;  %v1092_v63 = vsel %vm679_vm0, %v1079_v57, 0  ;;  %s3924_s18 = sld [smem:[#allocation39_spill]]  ;;  %s2544_s30 = sshll.u32 %s3247_s14, 4 }
  0x88   : > { %v710_v17 = vand.u32 4294901760, %v3469_v15  ;;  %v1145_v45 = vand.u32 4294901760, %v3486_v34  ;;  %v1151_v48 = vand.u32 4294901760, %v3491_v40  ;;  %v1162_v50 = vsub.f32 %v1080_v31, %v3493_v41  ;;  %s3925_s9 = sld [smem:[#allocation40_spill]]  ;;  %s640_s4 = scalar_lea.vmem [#allocation20], %s3422_s28 }
  0x89   : > { %v678_v19 = vld.sshfl [vmem:[#allocation1 + $0x20] sm:$0xff pattern:$0x73625140]  ;;  %v719_v24 = vsub.f32 %v3466_v14, %v718_v16  ;;  %v1157_v53 = vand.u32 4294901760, %v3499_v46  ;;  %v3508_v54 = vand.u32 4294901760, %v1089_v49  ;;  %v1122_v2 = vand.u32 4294901760, %v1092_v63 }
  0x8a   : > { %v688_v20 = vsel %vm679_vm0, %v678_v19, 0  ;;  %v711_v25 = vsub.f32 %v3469_v15, %v710_v17  ;;  %v1146_v52 = vsub.f32 %v3486_v34, %v1145_v45  ;;  %v1152_v55 = vsub.f32 %v3491_v40, %v1151_v48  ;;  %s2327_s14 = sshll.u32 %s640_s4, 4  ;;  %s2315_s28 = scalar_lea.sflag [#allocation7], %s3419_s22  ;;  %s2328_s14 = int_to_ptr.vmem [resolvable:$true] %s2327_s14 }
  0x8b   : > { %v704_v22 = vand.u32 4294901760, %v688_v20  ;;  %v720_v36 = vand.u32 4294901760, %v719_v24  ;;  %v1163_v56 = vand.u32 4294901760, %v1162_v50  ;;  %v1158_v59 = vsub.f32 %v3499_v46, %v1157_v53 }
  0x8c   : > { %v712_v37 = vand.u32 4294901760, %v711_v25  ;;  %v1147_v58 = vand.u32 4294901760, %v1146_v52  ;;  %v1115_v60 = vsub.f32 %v1089_v49, %v3508_v54  ;;  %v1153_v61 = vand.u32 4294901760, %v1152_v55 }
  0x8d   : > { %2545 = vmatpush.xpose.msra.mxu2 %v704_v22  ;;  %v677_v27 = vld.sshfl [vmem:[#allocation1] sm:$0xff pattern:$0x73625140]  ;;  %v740_v28 = vsub.f32 %v688_v20, %v704_v22  ;;  %705 = vmatpush.xpose.msra.mxu0 %v704_v22  ;;  %v1164_v62 = vsub.f32 %v1162_v50, %v1163_v56  ;;  %v1159_v0 = vand.u32 4294901760, %v1158_v59  ;;  %v1123_v5 = vsub.f32 %v1092_v63, %v1122_v2 }
  0x8e   : > { %v686_v30 = vsel %vm679_vm0, %v677_v27, 0  ;;  %v1116_v1 = vand.u32 4294901760, %v1115_v60  ;;  %v3134_v63 = vmov 0   ;;  %vm928_vm10 = vcmask 523520   ;;  %s2326_s20 = scalar_lea.hbm %s3925_s9, %s2544_s30  ;;  %s3059_s23 = scalar_lea.hbm %s3925_s9, 32 }
  0x8f   : > { %v706_v32 = vand.u32 4294901760, %v686_v30  ;;  %v741_v33 = vand.u32 4294901760, %v740_v28  ;;  %v1165_v3 = vand.u32 4294901760, %v1164_v62  ;;  %v1124_v7 = vand.u32 4294901760, %v1123_v5  ;;  %2691 = vset.pattern.permute.xlu1 %v3134_v63  ;;  %2690 = vset.pattern.permute.xlu0 %v3134_v63  ;;  %s2329_s12 = sshll.u32 %s2326_s20, 4  ;;  %s2330_s12 = int_to_ptr.hbm [resolvable:$true] %s2329_s12 }
  0x90   : > { %v1117_v4 = vsub.f32 %v1115_v60, %v1116_v1  ;;  %v3149_v63 = vmov 12   ;;  %vm1370_vm11 = vcmask 523264   ;;  %vm1567_vm12 = vcmask 1040384   ;;  %s3053_s8 = sshra.s32 %s2330_s12, 4  ;;  %s3054_s8 = int_to_ptr.hbm [resolvable:$true] %s3053_s8 }
  0x91   : > { %2546 = vmatpush.xpose.msra.mxu2 %v706_v32  ;;  %v742_v38 = vsub.f32 %v740_v28, %v741_v33  ;;  %v746_v39 = vsub.f32 %v686_v30, %v706_v32  ;;  %707 = vmatpush.xpose.msra.mxu0 %v706_v32  ;;  %v1125_v8 = vsub.f32 %v1123_v5, %v1124_v7  ;;  %vm1569_vm13 = vcmask 1041408   ;;  %s3055_s15 = scalar_lea.hbm %s3054_s8, 16  ;;  %p3060_p6 = scmp.lt.s32.totalorder %s3054_s8, %s3925_s9 }
  0x92   : > { %v1118_v6 = vand.u32 4294901760, %v1117_v4  ;;  %vm1571_vm14 = vcmask 1042432   ;;  %vm1573_vm15 = vcmask 1043456   ;;  %p3056_p13 = scmp.ne.s32.totalorder %s3054_s8, %s3055_s15  ;;  %p3061_p11 = scmp.lt.s32.totalorder %s3059_s23, %s3055_s15 }
  0x93   : > { %v743_v43 = vand.u32 4294901760, %v742_v38  ;;  %v747_v44 = vand.u32 4294901760, %v746_v39  ;;  %v1126_v9 = vand.u32 4294901760, %v1125_v8 }
  0x94   : > { %721 = vmatmul.f32.vlgmr.msra.gmra.mxu2 %v720_v36  ;;  %713 = vmatmul.f32.vlgmr.msra.gmra.mxu0 %v712_v37  ;;  %p3057_p7 = pnand %p3056_p13, %p3308_p0  ;;  %p3062_p12 = por %p3061_p11, %p3060_p6 }
  0x95   : > { %776 = vmatpush.xpose.msrb.mxu2 %v740_v28  ;;  %839 = vmatpush.xpose.msrb.mxu0 %v741_v33  ;;  %v748_v47 = vsub.f32 %v746_v39, %v747_v44 }
  0x96   : > { %2547 = vmatpush.xpose.msra.mxu3 %v743_v43  ;;  %744 = vmatpush.xpose.msra.mxu1 %v743_v43  ;;  %p3058_p10 = pneg %p3057_p7 }
  0x97   : > { %v749_v51 = vand.u32 4294901760, %v748_v47 }
  0x98   : > { %p3063_p3 = pnand %p3062_p12, %p3058_p10 }
  0x99   : > { %779 = vmatpush.xpose.msrb.mxu2 %v746_v39  ;;  %843 = vmatpush.xpose.msrb.mxu0 %v747_v44 }
  0x9a   : > { %2548 = vmatpush.xpose.msra.mxu3 %v749_v51  ;;  %750 = vmatpush.xpose.msra.mxu1 %v749_v51 }
  0x9c   : > { %782 = vmatmul.f32.vlgmr.msrb.gmra.mxu2 %v3469_v15  ;;  %845 = vmatmul.f32.vlgmr.msrb.gmra.mxu0 %v3463_v13 }
  0x9d   : > { %1107 = vmatpush.msra.mxu2 %v3474_v23  ;;  %1190 = vmatpush.msra.mxu0 %v3486_v34 }
  0x9e   : > { %806 = vmatpush.xpose.msrb.mxu3 %v704_v22  ;;  %868 = vmatpush.xpose.msrb.mxu1 %v704_v22 }
  0x9f   : > { %1109 = vmatpush.msra.mxu2 %v3482_v29  ;;  %1193 = vmatpush.msra.mxu0 %v3491_v40 }
  0xa0   : > { %756 = vmatmul.f32.vlgmr.msra.gmra.mxu3 %v3461_v12  ;;  %752 = vmatmul.f32.vlgmr.msra.gmra.mxu1 %v3463_v13 }
  0xa1   : > { %1111 = vmatpush.msra.mxu2 %v3488_v35  ;;  %1196 = vmatpush.msra.mxu0 %v3499_v46 }
  0xa2   : > { %808 = vmatpush.xpose.msrb.mxu3 %v706_v32  ;;  %870 = vmatpush.xpose.msrb.mxu1 %v706_v32 }
  0xa3   : > { %1113 = vmatpush.msra.mxu2 %v3493_v41  ;;  %1199 = vmatpush.msra.mxu0 %v1162_v50 }
  0xa4   : > { %787 = vmatmul.f32.gmra.mxu2 %v3466_v14  ;;  %849 = vmatmul.f32.gmra.mxu0 %v3461_v12 }
  0xa5   : > { %1259 = vmatpush.msrb.mxu2 %v1145_v45 }
  0xa6   : > { %1148 = vmatpush.msra.mxu3 %v1147_v58  ;;  %1224 = vmatpush.msra.mxu1 %v3474_v23 }
  0xa7   : > { %1263 = vmatpush.msrb.mxu2 %v1151_v48 }
  0xa8   : > { %1154 = vmatpush.msra.mxu3 %v1153_v61  ;;  %1226 = vmatpush.msra.mxu1 %v3482_v29  ;;  %v3133_v61 = vmov 1  }
  0xa9   : > { %812 = vmatmul.f32.vlgmr.msrb.gmra.mxu3 %v710_v17  ;;  %872 = vmatmul.f32.vlgmr.msrb.gmra.mxu1 %v3463_v13 }
  0xaa   : > { %1160 = vmatpush.msra.mxu3 %v1159_v0  ;;  %1228 = vmatpush.msra.mxu1 %v3488_v35 }
  0xab   : > { %1267 = vmatpush.msrb.mxu2 %v1157_v53  ;;  %2693 = vset.pattern.permute.xlu2 %v3133_v61 }
  0xac   : > { %1166 = vmatpush.msra.mxu3 %v1165_v3  ;;  %1230 = vmatpush.msra.mxu1 %v3493_v41 }
  0xad   : > { %1271 = vmatpush.msrb.mxu2 %v1163_v56  ;;  %1202 = vmatmul.f32.vlgmr.msra.gmra.mxu0 %v1115_v60 }
  0xae   : > { %1294 = vmatpush.msrb.mxu3 %v3474_v23  ;;  %1119 = vmatmul.f32.vlgmr.msra.gmra.mxu2 %v1118_v6 }
  0xb0   : > { %1296 = vmatpush.msrb.mxu3 %v3482_v29  ;;  %v2722_v29 = vld [vmem:[%s3868_s7] ss:$0 sm:$0xff] }
  0xb1   : > { %818 = vmatmul.f32.gmra.mxu3 %v718_v16  ;;  %876 = vmatmul.f32.gmra.mxu1 %v3461_v12 }
  0xb2   : > { %1298 = vmatpush.msrb.mxu3 %v3488_v35 }
  0xb4   : > { %1300 = vmatpush.msrb.mxu3 %v3493_v41 }
  0xb5   : > { %1207 = vmatmul.f32.gmra.mxu0 %v1123_v5 }
  0xb6   : > { %1127 = vmatmul.f32.gmra.mxu2 %v1126_v9 }
  0xb9   : > { %1168 = vmatmul.f32.vlgmr.msra.gmra.mxu3 %v3508_v54  ;;  %1234 = vmatmul.f32.vlgmr.msra.gmra.mxu1 %v1116_v1 }
  0xbe   : > { %1273 = vmatmul.f32.vlgmr.msrb.gmra.mxu2 %v3508_v54 }
  0xc1   : > { %1172 = vmatmul.f32.gmra.mxu3 %v1122_v2  ;;  %1240 = vmatmul.f32.gmra.mxu1 %v1124_v7 }
  0xc6   : > { %1277 = vmatmul.f32.gmra.mxu2 %v1122_v2 }
  0xc9   : > { %1302 = vmatmul.f32.vlgmr.msrb.gmra.mxu3 %v3508_v54 }
  0xd1   : > { %1306 = vmatmul.f32.gmra.mxu3 %v1122_v2 }
 0x111   : > { %v714_v11 = vpop.f32.mrf.mxu0 }
 0x117   : > { %v722_v10 = vpop.f32.mrf.mxu2 }
 0x119   : > { %v846_v16 = vpop.f32.mrf.mxu0 }
 0x11d   : > { %v753_v12 = vpop.f32.mrf.mxu1 }
 0x11e   : > { %v754_v15 = vadd.f32 %v753_v12, %v714_v11 }
 0x11f   : > { %v783_v14 = vpop.f32.mrf.mxu2 }
 0x120   : > { %v784_v20 = vadd.f32 %v783_v14, %v754_v15 }
 0x121   : > { %v850_v25 = vpop.f32.mrf.mxu0 }
 0x123   : > { %v757_v13 = vpop.f32.mrf.mxu3 }
 0x124   : > { %v758_v22 = vadd.f32 %v757_v13, %v722_v10 }
 0x126   : > { %v873_v17 = vpop.f32.mrf.mxu1 }
 0x127   : > { %v788_v18 = vpop.f32.mrf.mxu2 }
 0x128   : > { %v789_v23 = vadd.f32 %v788_v18, %v758_v22 }
 0x12a   : > { %v1203_v42 = vpop.f32.mrf.mxu0 }
 0x12c   : > { %v813_v19 = vpop.f32.mrf.mxu3 }
 0x12d   : > { %v814_v21 = vadd.f32 %v813_v19, %v784_v20 }
 0x12e   : > { %v877_v30 = vpop.f32.mrf.mxu1 }
 0x12f   : > { %v847_v24 = vadd.f32 %v846_v16, %v814_v21 }
 0x131   : > { %v1120_v27 = vpop.f32.mrf.mxu2  ;;  %v874_v31 = vadd.f32 %v873_v17, %v847_v24 }
 0x132   : > { %v1121_v34 = vadd.f32 %v2722_v29, %v1120_v27  ;;  %v1208_v1 = vpop.f32.mrf.mxu0 }
 0x133   : > { %v881_v35 = vsel %vm880_vm1, %v874_v31, -inf }
 0x134   : > { %v819_v26 = vpop.f32.mrf.mxu3 }
 0x135   : > { %v820_v28 = vadd.f32 %v819_v26, %v789_v23 }
 0x136   : > { %v1235_v46 = vpop.f32.mrf.mxu1 }
 0x137   : > { %v851_v32 = vadd.f32 %v850_v25, %v820_v28 }
 0x139   : > { %v878_v33 = vadd.f32 %v877_v30, %v851_v32  ;;  %v1128_v39 = vpop.f32.mrf.mxu2 }
 0x13a   : > { %v1129_v56 = vadd.f32 %v2722_v29, %v1128_v39  ;;  %v3136_v39 = vmov 2  }
 0x13b   : > { %v882_v36 = vsel %vm880_vm1, %v878_v33, -inf }
 0x13c   : > { %v883_v37 = vmax.f32 %v881_v35, %v882_v36  ;;  %v1169_v38 = vpop.f32.mrf.mxu3 }
 0x13d   : > { %v1170_v40 = vadd.f32 %v1169_v38, %v1121_v34 }
 0x13e   : > { %v884_v41 = vrot.slane %v883_v37, 4  ;;  %v1241_v3 = vpop.f32.mrf.mxu1 }
 0x13f   : > { %v1204_v44 = vadd.f32 %v1203_v42, %v1170_v40  ;;  %v3137_v40 = vmov 3  }
 0x140   : > { %v885_v43 = vmax.f32 %v883_v37, %v884_v41 }
 0x141   : > { %v1236_v49 = vadd.f32 %v1235_v46, %v1204_v44  ;;  %v1274_v51 = vpop.f32.mrf.mxu2  ;;  %v3139_v44 = vmov 5  }
 0x142   : > { %v886_v45 = vrot.slane %v885_v43, 2 }
 0x143   : > { %v1275_v53 = vadd.f32 %v1274_v51, %v1236_v49 }
 0x144   : > { %v887_v47 = vmax.f32 %v885_v43, %v886_v45  ;;  %v1173_v48 = vpop.f32.mrf.mxu3  ;;  %v3138_v43 = vmov 4  }
 0x145   : > { %v1174_v62 = vadd.f32 %v1173_v48, %v1129_v56  ;;  %v3144_v56 = vmov 7  }
 0x146   : > { %v888_v50 = vrot.slane %v887_v47, 1 }
 0x147   : > { %v1209_v2 = vadd.f32 %v1208_v1, %v1174_v62  ;;  %v3148_v62 = vmov 11   ;;  %v3150_v1 = vmov 14  }
 0x148   : > { %v889_v52 = vmax.f32 %v887_v47, %v888_v50  ;;  %v3140_v50 = vmov 8  }
 0x149   : > { %v1242_v9 = vadd.f32 %v1241_v3, %v1209_v2  ;;  %v1278_v12 = vpop.f32.mrf.mxu2 }
 0x14a   : > { %v890_v54 = vsub.f32 %v874_v31, %v889_v52  ;;  %v891_v55 = vsub.f32 %v878_v33, %v889_v52 }
 0x14b   : > { %v1279_v15 = vadd.f32 %v1278_v12, %v1242_v9 }
 0x14c   : > { %v892_v57 = vmul.f32 1.442695, %v890_v54  ;;  %v894_v58 = vmul.f32 1.442695, %v891_v55  ;;  %v1303_v59 = vpop.f32.mrf.mxu3  ;;  %v3141_v54 = vmov 6   ;;  %v3143_v55 = vmov 10  }
 0x14d   : > { %v1304_v60 = vadd.f32 %v1303_v59, %v1275_v53  ;;  %v3147_v59 = vmov 15  }
 0x14e   : > { %2739 = vpow2.f32 %v892_v57  ;;  %v3145_v57 = vmov 13  }
 0x14f   : > { %2741 = vpow2.f32 %v894_v58  ;;  %v2532_v0 = vmul.f32 -1.442695, %v1304_v60  ;;  %v3146_v58 = vmov 9  }
 0x150   : > { %2743 = vtanh.f32 %v1304_v60 }
 0x151   : > { %2745 = vpow2.f32 %v2532_v0 }
 0x154   : > { %v2740_v4 = vpop.eup %2739  ;;  %v1307_v17 = vpop.f32.mrf.mxu3 }
 0x155   : > { %v2742_v5 = vpop.eup %2741  ;;  %v896_v6 = vsel %vm880_vm1, %v2740_v4, 0.0  ;;  %v3553_v19 = vadd.f32 %v1307_v17, %v1279_v15 }
 0x156   : > { %v2744_v7 = vpop.eup %2743  ;;  %v897_v8 = vsel %vm880_vm1, %v2742_v5, 0.0  ;;  %vm1575_vm1 = vcmask 1044480  }
 0x157   : > { %v2746_v10 = vpop.eup %2745  ;;  %v898_v11 = vadd.f32 %v897_v8, %v896_v6  ;;  %1352 = vrot.lane.b32.xlu2 %v2744_v7, %s3135_s5  ;;  %v2533_v24 = vmul.f32 -1.442695, %v3553_v19 }
 0x158   : > { %v1316_v13 = vadd.f32 1.0, %v2746_v10 }
 0x159   : > { %v899_v14 = vrot.slane %v898_v11, 4 }
 0x15a   : > { %2747 = vrcp.f32 %v1316_v13  ;;  %v1329_v28 = vand.u32 2147483648, %v1316_v13  ;;  %vm1323_vm2 = vweird.f32 %v1316_v13  ;;  %v1327_v30 = vand.u32 2147483647, %v1316_v13 }
 0x15b   : > { %v900_v16 = vadd.f32 %v899_v14, %v898_v11 }
 0x15c   : > { %v1330_v31 = vor.u32 1.1754944e-38, %v1329_v28  ;;  %vm1328_vm5 = vcmp.eq.f32.partialorder %v1327_v30, 8.507059e+37 }
 0x15d   : > { %v901_v18 = vrot.slane %v900_v16, 2 }
 0x15f   : > { %v902_v20 = vadd.f32 %v901_v18, %v900_v16 }
 0x160   : > { %v2748_v21 = vpop.eup %2747 }
 0x161   : > { %v903_v22 = vrot.slane %v902_v20, 1  ;;  %v1319_v23 = vmul.f32 %v2748_v21, %v1316_v13  ;;  %vm1324_vm3 = vweird.f32 %v2748_v21 }
 0x162   : > { %vm1325_vm4 = vmor %vm1323_vm2, %vm1324_vm3  ;;  %vm1577_vm2 = vcmask 1045504   ;;  %vm1579_vm3 = vcmask 1046528  }
 0x163   : > { %v904_v25 = vadd.f32 %v903_v22, %v902_v20  ;;  %v1320_v26 = vsub.f32 1.0, %v1319_v23 }
 0x165   : > { %2749 = vrcp.f32 %v904_v25  ;;  %v1321_v27 = vmul.f32 %v2748_v21, %v1320_v26 }
 0x166   : > { %2751 = vpow2.f32 %v2533_v24 }
 0x167   : > { %v1322_v29 = vadd.f32 %v2748_v21, %v1321_v27 }
 0x169   : > { %v1326_v32 = vsel %vm1325_vm4, %v2748_v21, %v1322_v29 }
 0x16a   : > { %v1331_v33 = vsel %vm1328_vm5, %v1330_v31, %v1326_v32  ;;  %v3626_v32 = vld [vmem:[#allocation13 + $0x8] sm:$0xff] }
 0x16b   : > { %v2750_v34 = vpop.eup %2749  ;;  %1350 = vst.msk [vmem:[#allocation3] sm:$0xff] %vm679_vm0, %v1331_v33 }
 0x16c   : > { %v2752_v35 = vpop.eup %2751  ;;  %v3557_v36 = vmul.f32 %v2750_v34, %v2740_v4  ;;  %v3559_v37 = vmul.f32 %v2750_v34, %v2742_v5 }
 0x16d   : > { %v1317_v38 = vadd.f32 1.0, %v2752_v35  ;;  %v3629_v35 = vld [vmem:[#allocation13] sm:$0xff] }
 0x16e   : > { %925 = vperm.xlu2 %2693, %v3559_v37   ;;  %915 = vperm.xlu1 %2691, %v3559_v37  }
 0x16f   : > { %910 = vperm.xlu0 %2690, %v3557_v36   ;;  %2753 = vrcp.f32 %v1317_v38  ;;  %vm1338_vm6 = vweird.f32 %v1317_v38  ;;  %v1344_v47 = vand.u32 2147483648, %v1317_v38  ;;  %v1342_v49 = vand.u32 2147483647, %v1317_v38 }
 0x170   : > { %2755 = vtanh.f32 %v3553_v19 }
 0x171   : > { %v1345_v51 = vor.u32 1.1754944e-38, %v1344_v47  ;;  %vm1343_vm9 = vcmp.eq.f32.partialorder %v1342_v49, 8.507059e+37 }
 0x175   : > { %v2754_v41 = vpop.eup %2753 }
 0x176   : > { %2695 = vset.pattern.permute.xlu2 %v3136_v39  ;;  %2692 = vset.pattern.permute.xlu1 %v3133_v61  ;;  %v1334_v42 = vmul.f32 %v2754_v41, %v1317_v38  ;;  %vm1339_vm7 = vweird.f32 %v2754_v41  ;;  %v2756_v61 = vpop.eup %2755 }
 0x177   : > { %2696 = vset.pattern.permute.xlu0 %v3137_v40  ;;  %936 = vperm.xlu2 %2695, %v3559_v37   ;;  %vm1340_vm8 = vmor %vm1338_vm6, %vm1339_vm7 }
 0x178   : > { %921 = vperm.xlu1 %2692, %v3557_v36   ;;  %943 = vperm.xlu0 %2696, %v3557_v36   ;;  %v1335_v45 = vsub.f32 1.0, %v1334_v42 }
 0x17a   : > { %v1336_v46 = vmul.f32 %v2754_v41, %v1335_v45 }
 0x17c   : > { %v1337_v48 = vadd.f32 %v2754_v41, %v1336_v46 }
 0x17e   : > { %v1341_v52 = vsel %vm1340_vm8, %v2754_v41, %v1337_v48 }
 0x17f   : > { %2698 = vset.pattern.permute.xlu2 %v3138_v43  ;;  %v1346_v53 = vsel %vm1343_vm9, %v1345_v51, %v1341_v52  ;;  %v1591_v52 = vld [vmem:[#allocation17 + $0x8] sm:$0xff] }
 0x180   : > { %2694 = vset.pattern.permute.xlu1 %v3136_v39  ;;  %2701 = vset.pattern.permute.xlu0 %v3139_v44 }
 0x181   : > { %953 = vperm.xlu2 %2698, %v3557_v36   ;;  %932 = vperm.xlu1 %2694, %v3557_v36  }
 0x182   : > { %968 = vperm.xlu0 %2701, %v3559_v37  }
 0x189   : > { %2700 = vset.pattern.permute.xlu2 %v3139_v44  ;;  %2697 = vset.pattern.permute.xlu1 %v3137_v40  ;;  %v1592_v44 = vld [vmem:[#allocation17 + $0x10] sm:$0xff] }
 0x18a   : > { %2706 = vset.pattern.permute.xlu0 %v3140_v50  ;;  %964 = vperm.xlu2 %2700, %v3557_v36   ;;  %v3647_v49 = vand.u32 4294901760, %v1592_v44 }
 0x18b   : > { %947 = vperm.xlu1 %2697, %v3559_v37   ;;  %995 = vperm.xlu0 %2706, %v3557_v36  }
 0x192   : > { %2703 = vset.pattern.permute.xlu2 %v3141_v54 }
 0x193   : > { %2699 = vset.pattern.permute.xlu1 %v3138_v43  ;;  %1357 = vrot.lane.b32.xlu0 %v1346_v53, %s3142_s13  ;;  %v1584_v53 = vld [vmem:[%s547_s16] sm:$0xff] }
 0x194   : > { %978 = vperm.xlu2 %2703, %v3559_v37   ;;  %957 = vperm.xlu1 %2699, %v3559_v37  }
 0x195   : > { %2711 = vset.pattern.permute.xlu0 %v3143_v55 }
 0x19b   : > { %1020 = vperm.xlu0 %2711, %v3559_v37  }
 0x19c   : > { %2705 = vset.pattern.permute.xlu2 %v3144_v56  ;;  %2702 = vset.pattern.permute.xlu1 %v3141_v54 }
 0x19d   : > { %989 = vperm.xlu2 %2705, %v3559_v37   ;;  %974 = vperm.xlu1 %2702, %v3557_v36  }
 0x1a3   : > { %2716 = vset.pattern.permute.xlu0 %v3145_v57 }
 0x1a4   : > { %1048 = vperm.xlu0 %2716, %v3557_v36  }
 0x1a5   : > { %2708 = vset.pattern.permute.xlu2 %v3146_v58  ;;  %2704 = vset.pattern.permute.xlu1 %v3144_v56 }
 0x1a6   : > { %1006 = vperm.xlu2 %2708, %v3557_v36   ;;  %985 = vperm.xlu1 %2704, %v3557_v36  }
 0x1ac   : > { %2721 = vset.pattern.permute.xlu0 %v3147_v59 }
 0x1ad   : > { %1073 = vperm.xlu0 %2721, %v3559_v37  }
 0x1ae   : > { %2710 = vset.pattern.permute.xlu2 %v3143_v55  ;;  %2707 = vset.pattern.permute.xlu1 %v3140_v50 }
 0x1af   : > { %1016 = vperm.xlu2 %2710, %v3557_v36   ;;  %999 = vperm.xlu1 %2707, %v3559_v37  }
 0x1b1   : > { %v1353_v60 = vpop.permute.xlu2 %1352 }
 0x1b2   : > { %1355 = vst.msk [vmem:[#allocation4] sm:$0xff] %vm679_vm0, %v1353_v60  ;;  %v1595_v60 = vsel %vm679_vm0, %v1584_v53, 0  ;;  %v1588_v53 = vld [vmem:[#allocation16 + $0x10] sm:$0xff] }
 0x1b3   : > { %1361 = vst.msk [vmem:[#allocation4] sm:$0xff] %vm928_vm10, %v2756_v61 }
 0x1b7   : > { %2713 = vset.pattern.permute.xlu2 %v3148_v62  ;;  %2709 = vset.pattern.permute.xlu1 %v3146_v58  ;;  %v3656_v58 = vand.u32 4294901760, %v1591_v52 }
 0x1b8   : > { %1031 = vperm.xlu2 %2713, %v3559_v37   ;;  %1010 = vperm.xlu1 %2709, %v3559_v37  }
 0x1ba   : > { %v2724_v34 = vld [vmem:[#allocation4] ss:$0 sm:$0xff]  ;;  %v2726_v50 = vld [vmem:[#allocation4 + $0x1] ss:$0 sm:$0xff] }
 0x1c0   : > { %2715 = vset.pattern.permute.xlu2 %v3149_v63  ;;  %2712 = vset.pattern.permute.xlu1 %v3148_v62  ;;  %v1590_v62 = vld [vmem:[#allocation17] sm:$0xff] }
 0x1c1   : > { %1041 = vperm.xlu2 %2715, %v3559_v37   ;;  %1027 = vperm.xlu1 %2712, %v3557_v36  }
 0x1c8   : > { %v926_v0 = vpop.permute.xlu2 %925 }
 0x1c9   : > { %2718 = vset.pattern.permute.xlu2 %v3150_v1  ;;  %2714 = vset.pattern.permute.xlu1 %v3149_v63  ;;  %v3663_v63 = vand.u32 4294901760, %v1595_v60 }
 0x1ca   : > { %1058 = vperm.xlu2 %2718, %v3557_v36   ;;  %1037 = vperm.xlu1 %2714, %v3557_v36  }
 0x1d1   : > { %v937_v2 = vpop.permute.xlu2 %936 }
 0x1d2   : > { %2720 = vset.pattern.permute.xlu2 %v3147_v59  ;;  %2717 = vset.pattern.permute.xlu1 %v3145_v57  ;;  %941 = vst.msk [vmem:[#allocation2 + $0x18] sm:$0xff] %vm679_vm0, %v937_v2  ;;  %v1656_v59 = vsub.f32 %v1592_v44, %v3647_v49  ;;  %v2728_v44 = vld [vmem:[#allocation4 + $0x2] ss:$0 sm:$0xff] }
 0x1d3   : > { %1069 = vperm.xlu2 %2720, %v3557_v36   ;;  %1052 = vperm.xlu1 %2717, %v3559_v37  }
 0x1db   : > { %2719 = vset.pattern.permute.xlu1 %v3150_v1  ;;  %v954_v3 = vpop.permute.xlu2 %953 }
 0x1dc   : > { %961 = vst.msk [vmem:[#allocation2 + $0x20] sm:$0xff] %vm679_vm0, %v954_v3  ;;  %1062 = vperm.xlu1 %2719, %v3559_v37   ;;  %v1593_v37 = vld [vmem:[#allocation17 + $0x18] sm:$0xff] }
 0x1dd   : > { %v3636_v42 = vand.u32 4294901760, %v1593_v37 }
 0x1df   : > { %1613 = vmatpush.msrb.mxu0 %v3636_v42  ;;  %v1650_v48 = vsub.f32 %v1593_v37, %v3636_v42  ;;  %1730 = vmatpush.msra.mxu3 %v3636_v42 }
 0x1e0   : > { %v916_v4 = vpop.permute.xlu1 %915 }
 0x1e1   : > { %919 = vst.msk [vmem:[#allocation2 + $0x8] sm:$0xff] %vm679_vm0, %v916_v4  ;;  %v911_v5 = vpop.permute.xlu0 %910  ;;  %1615 = vmatpush.msrb.mxu0 %v3647_v49  ;;  %v1651_v57 = vand.u32 4294901760, %v1650_v48  ;;  %1732 = vmatpush.msra.mxu3 %v3647_v49  ;;  %v1657_v4 = vand.u32 4294901760, %v1656_v59 }
 0x1e2   : > { %930 = vst.msk [vmem:[#allocation2 + $0x8] sm:$0xff] %vm928_vm10, %v926_v0  ;;  %1696 = vmatpush.msra.mxu2 %v1650_v48 }
 0x1e3   : > { %918 = vst.msk [vmem:[#allocation2] sm:$0xff] %vm679_vm0, %v911_v5  ;;  %v1652_v3 = vsub.f32 %v1650_v48, %v1651_v57  ;;  %1617 = vmatpush.msrb.mxu0 %v3656_v58  ;;  %v3668_v5 = vand.u32 4294901760, %v1590_v62  ;;  %1734 = vmatpush.msra.mxu3 %v3656_v58 }
 0x1e4   : > { %v965_v6 = vpop.permute.xlu2 %964  ;;  %1699 = vmatpush.msra.mxu2 %v1656_v59 }
 0x1e5   : > { %971 = vst.msk [vmem:[#allocation2 + $0x20] sm:$0xff] %vm928_vm10, %v965_v6  ;;  %v1662_v6 = vsub.f32 %v1591_v52, %v3656_v58  ;;  %1619 = vmatpush.msrb.mxu0 %v3668_v5  ;;  %1736 = vmatpush.msra.mxu3 %v3668_v5  ;;  %v1589_v52 = vld [vmem:[#allocation16 + $0x18] sm:$0xff] }
 0x1e7   : > { %1765 = vmatpush.msra.mxu0 %v1651_v57  ;;  %1702 = vmatpush.msra.mxu2 %v1662_v6 }
 0x1e9   : > { %v3618_v23 = vld [vmem:[#allocation2 + $0x8] sm:$0xff]  ;;  %1769 = vmatpush.msra.mxu0 %v1657_v4 }
 0x1ea   : > { %v922_v7 = vpop.permute.xlu1 %921  ;;  %v944_v8 = vpop.permute.xlu0 %943  ;;  %v1389_v39 = vmul.f32 %v2724_v34, %v3618_v23 }
 0x1eb   : > { %929 = vst.msk [vmem:[#allocation2] sm:$0xff] %vm928_vm10, %v922_v7 }
 0x1ec   : > { %v3672_v7 = vld [vmem:[#allocation2 + $0x20] sm:$0xff] }
 0x1ee   : > { %v979_v9 = vpop.permute.xlu2 %978 }
 0x1ef   : > { %983 = vst.msk [vmem:[#allocation2 + $0x38] sm:$0xff] %vm679_vm0, %v979_v9 }
 0x1f2   : > { %v3621_v25 = vld [vmem:[#allocation2] sm:$0xff] }
 0x1f3   : > { %v933_v10 = vpop.permute.xlu1 %932  ;;  %v1388_v45 = vmul.f32 %v2724_v34, %v3621_v25 }
 0x1f4   : > { %940 = vst.msk [vmem:[#allocation2 + $0x10] sm:$0xff] %vm679_vm0, %v933_v10  ;;  %v969_v11 = vpop.permute.xlu0 %968 }
 0x1f5   : > { %950 = vst.msk [vmem:[#allocation2 + $0x10] sm:$0xff] %vm928_vm10, %v944_v8  ;;  %v1621_v8 = vsub.f32 %v1595_v60, %v3663_v63  ;;  %v3705_v60 = vand.u32 4294901760, %v1588_v53 }
 0x1f7   : > { %v990_v12 = vpop.permute.xlu2 %989 }
 0x1f8   : > { %993 = vst.msk [vmem:[#allocation2 + $0x38] sm:$0xff] %vm928_vm10, %v990_v12  ;;  %v1653_v12 = vand.u32 4294901760, %v1652_v3 }
 0x1fa   : > { %1654 = vmatpush.msrb.mxu1 %v1653_v12 }
 0x1fc   : > { %v3638_v43 = vld [vmem:[#allocation2 + $0x10] sm:$0xff] }
 0x1fd   : > { %v948_v13 = vpop.permute.xlu1 %947  ;;  %v996_v14 = vpop.permute.xlu0 %995 }
 0x1fe   : > { %951 = vst.msk [vmem:[#allocation2 + $0x18] sm:$0xff] %vm928_vm10, %v948_v13  ;;  %v1658_v13 = vsub.f32 %v1656_v59, %v1657_v4  ;;  %v3703_v59 = vand.u32 4294901760, %v1589_v52 }
 0x1ff   : > { %1003 = vst.msk [vmem:[#allocation2 + $0x40] sm:$0xff] %vm679_vm0, %v996_v14  ;;  %v1663_v14 = vand.u32 4294901760, %v1662_v6 }
 0x200   : > { %v1007_v15 = vpop.permute.xlu2 %1006 }
 0x201   : > { %1013 = vst.msk [vmem:[#allocation2 + $0x40] sm:$0xff] %vm928_vm10, %v1007_v15  ;;  %v1668_v15 = vsub.f32 %v1590_v62, %v3668_v5  ;;  %1773 = vmatpush.msra.mxu0 %v1663_v14 }
 0x203   : > { %1705 = vmatpush.msra.mxu2 %v1668_v15 }
 0x204   : > { %1708 = vmatmul.f32.vlgmr.msra.gmra.mxu2 %v1621_v8 }
 0x205   : > { %v1358_v16 = vpop.permute.xlu0 %1357  ;;  %v3631_v36 = vld [vmem:[#allocation2 + $0x18] sm:$0xff]  ;;  %1833 = vmatpush.msrb.mxu2 %v3703_v59 }
 0x206   : > { %1360 = vst.msk [vmem:[#allocation3] sm:$0xff] %vm928_vm10, %v1358_v16  ;;  %v958_v17 = vpop.permute.xlu1 %957  ;;  %v1416_v2 = vmul.f32 %v2726_v50, %v3631_v36 }
 0x207   : > { %962 = vst.msk [vmem:[#allocation2 + $0x28] sm:$0xff] %vm679_vm0, %v958_v17  ;;  %v1622_v17 = vand.u32 4294901760, %v1621_v8  ;;  %1835 = vmatpush.msrb.mxu2 %v3705_v60 }
 0x208   : > { %972 = vst.msk [vmem:[#allocation2 + $0x28] sm:$0xff] %vm928_vm10, %v969_v11 }
 0x209   : > { %v1017_v18 = vpop.permute.xlu2 %1016  ;;  %1740 = vmatmul.f32.vlgmr.msra.gmra.mxu3 %v1622_v17 }
 0x20a   : > { %1024 = vst.msk [vmem:[#allocation2 + $0x50] sm:$0xff] %vm679_vm0, %v1017_v18  ;;  %v1415_v18 = vmul.f32 %v2726_v50, %v3638_v43 }
 0x20d   : > { %v1021_v19 = vpop.permute.xlu0 %1020  ;;  %v2723_v22 = vld [vmem:[#allocation3] ss:$0 sm:$0xff]  ;;  %v2725_v31 = vld [vmem:[#allocation3 + $0x1] ss:$0 sm:$0xff]  ;;  %v2727_v56 = vld [vmem:[#allocation3 + $0x2] ss:$0 sm:$0xff] }
 0x20e   : > { %1025 = vst.msk [vmem:[#allocation2 + $0x58] sm:$0xff] %vm679_vm0, %v1021_v19  ;;  %v1382_v24 = vmul.f32 %v2723_v22, %v3618_v23  ;;  %v1381_v27 = vmul.f32 %v2723_v22, %v3621_v25  ;;  %v1409_v40 = vmul.f32 %v2725_v31, %v3631_v36  ;;  %v1408_v47 = vmul.f32 %v2725_v31, %v3638_v43 }
 0x20f   : > { %v975_v20 = vpop.permute.xlu1 %974  ;;  %v3661_v61 = vld [vmem:[#allocation2 + $0x28] sm:$0xff]  ;;  %v1435_v10 = vmul.f32 %v2727_v56, %v3672_v7  ;;  %v1669_v22 = vand.u32 4294901760, %v1668_v15 }
 0x210   : > { %982 = vst.msk [vmem:[#allocation2 + $0x30] sm:$0xff] %vm679_vm0, %v975_v20  ;;  %v1384_v28 = vsub.f32 1.0, %v1382_v24  ;;  %v1383_v30 = vsub.f32 1.0, %v1381_v27  ;;  %v1411_v55 = vsub.f32 1.0, %v1409_v40  ;;  %v1410_v0 = vsub.f32 1.0, %v1408_v47 }
 0x211   : > { %v1436_v11 = vmul.f32 %v2727_v56, %v3661_v61  ;;  %v1659_v20 = vand.u32 4294901760, %v1658_v13  ;;  %v1623_v27 = vsub.f32 %v1621_v8, %v1622_v17  ;;  %v1670_v34 = vsub.f32 %v1668_v15, %v1669_v22  ;;  %1777 = vmatpush.msra.mxu0 %v1669_v22  ;;  %v2730_v22 = vld [vmem:[#allocation4 + $0x3] ss:$0 sm:$0xff] }
 0x212   : > { %v1032_v21 = vpop.permute.xlu2 %1031  ;;  %v1386_v33 = vmul.f32 %v1384_v28, %v3626_v32  ;;  %v1385_v38 = vmul.f32 %v1383_v30, %v3629_v35  ;;  %v1585_v28 = vld [vmem:[%s547_s16 + $0x8] sm:$0xff]  ;;  %v1443_v57 = vmul.f32 %v2728_v44, %v3661_v61 }
 0x213   : > { %1035 = vst.msk [vmem:[#allocation2 + $0x58] sm:$0xff] %vm928_vm10, %v1032_v21  ;;  %v1664_v21 = vsub.f32 %v1662_v6, %v1663_v14  ;;  %v1438_v30 = vsub.f32 1.0, %v1436_v11  ;;  %1660 = vmatpush.msrb.mxu1 %v1659_v20  ;;  %v1598_v37 = vsel %vm679_vm0, %v1585_v28, 0  ;;  %v1671_v48 = vand.u32 4294901760, %v1670_v34  ;;  %v2731_v6 = vld [vmem:[#allocation3 + $0x4] ss:$0 sm:$0xff] }
 0x214   : > { %v3642_v46 = vadd.f32 %v1389_v39, %v1386_v33  ;;  %v3652_v54 = vadd.f32 %v1388_v45, %v1385_v38  ;;  %v1437_v38 = vsub.f32 1.0, %v1435_v10  ;;  %v1624_v39 = vand.u32 4294901760, %v1623_v27  ;;  %v3696_v45 = vld [vmem:[#allocation2 + $0x38] sm:$0xff]  ;;  %v1473_v28 = vld [vmem:[#allocation2 + $0x40] sm:$0xff] }
 0x215   : > { %v1665_v33 = vand.u32 4294901760, %v1664_v21  ;;  %v3693_v40 = vand.u32 4294901760, %v1598_v37  ;;  %v3720_v10 = vsub.f32 %v1588_v53, %v3705_v60 }
 0x216   : > { %v1413_v1 = vmul.f32 %v1411_v55, %v3642_v46  ;;  %v1412_v9 = vmul.f32 %v1410_v0, %v3652_v54  ;;  %1625 = vmatmul.f32.vlgmr.msrb.gmra.mxu0 %v1624_v39  ;;  %v1587_v55 = vld [vmem:[#allocation16 + $0x8] sm:$0xff] }
 0x217   : > { %1666 = vmatpush.msrb.mxu1 %v1665_v33  ;;  %v3707_v62 = vand.u32 4294901760, %v1587_v55 }
 0x218   : > { %v986_v26 = vpop.permute.xlu1 %985  ;;  %v3682_v19 = vadd.f32 %v1416_v2, %v1413_v1  ;;  %v1442_v1 = vmul.f32 %v2728_v44, %v3672_v7 }
 0x219   : > { %992 = vst.msk [vmem:[#allocation2 + $0x30] sm:$0xff] %vm928_vm10, %v986_v26  ;;  %v2729_v26 = vld [vmem:[#allocation3 + $0x3] ss:$0 sm:$0xff]  ;;  %1672 = vmatpush.msrb.mxu1 %v1671_v48  ;;  %v3723_v11 = vsub.f32 %v1587_v55, %v3707_v62  ;;  %1837 = vmatpush.msrb.mxu2 %v3707_v62 }
 0x21a   : > { %v1463_v50 = vmul.f32 %v2729_v26, %v3696_v45  ;;  %1674 = vmatmul.f32.vlgmr.msrb.gmra.mxu1 %v3663_v63 }
 0x21b   : > { %v1042_v29 = vpop.permute.xlu2 %1041  ;;  %1800 = vmatpush.msra.mxu1 %v3636_v42  ;;  %v1883_v17 = vand.u32 4294901760, %v3723_v11 }
 0x21c   : > { %1046 = vst.msk [vmem:[#allocation2 + $0x68] sm:$0xff] %vm679_vm0, %v1042_v29  ;;  %v3689_v29 = vadd.f32 %v1415_v18, %v1412_v9  ;;  %v3717_v9 = vsub.f32 %v1589_v52, %v3703_v59  ;;  %v1465_v12 = vsub.f32 1.0, %v1463_v50  ;;  %v1049_v52 = vpop.permute.xlu0 %1048 }
 0x21d   : > { %1802 = vmatpush.msra.mxu1 %v3647_v49  ;;  %v1884_v27 = vsub.f32 %v3723_v11, %v1883_v17 }
 0x21e   : > { %v1439_v56 = vmul.f32 %v1437_v38, %v3689_v29  ;;  %v1871_v42 = vand.u32 4294901760, %v3717_v9  ;;  %1916 = vmatpush.msrb.mxu0 %v3717_v9 }
 0x21f   : > { %1804 = vmatpush.msra.mxu1 %v3656_v58  ;;  %v1470_v58 = vmul.f32 %v2730_v22, %v3696_v45 }
 0x220   : > { %v3685_v24 = vld [vmem:[#allocation2 + $0x30] sm:$0xff]  ;;  %v3726_v14 = vadd.f32 %v1442_v1, %v1439_v56  ;;  %v1872_v49 = vsub.f32 %v3717_v9, %v1871_v42  ;;  %1919 = vmatpush.msrb.mxu0 %v3720_v10  ;;  %v1501_v56 = vld [vmem:[#allocation2 + $0x58] sm:$0xff]  ;;  %v1397_v1 = vmul.f32 %v3631_v36, %v3642_v46 }
 0x221   : > { %v1000_v41 = vpop.permute.xlu1 %999  ;;  %v1462_v47 = vmul.f32 %v2729_v26, %v3685_v24  ;;  %1806 = vmatpush.msra.mxu1 %v3668_v5  ;;  %v2733_v5 = vld [vmem:[#allocation3 + $0x5] ss:$0 sm:$0xff] }
 0x222   : > { %1004 = vst.msk [vmem:[#allocation2 + $0x48] sm:$0xff] %vm679_vm0, %v1000_v41  ;;  %v1440_v41 = vmul.f32 %v1438_v30, %v3682_v19  ;;  %v1469_v30 = vmul.f32 %v2730_v22, %v3685_v24  ;;  %v1873_v34 = vand.u32 4294901760, %v1872_v49  ;;  %1922 = vmatpush.msrb.mxu0 %v3723_v11  ;;  %1678 = vmatmul.f32.gmra.mxu1 %v3693_v40  ;;  %v2734_v49 = vld [vmem:[#allocation4 + $0x5] ss:$0 sm:$0xff] }
 0x223   : > { %v1464_v3 = vsub.f32 1.0, %v1462_v47  ;;  %1950 = vmatpush.msrb.mxu1 %v3703_v59  ;;  %v1450_v36 = vmul.f32 %v3685_v24, %v3726_v14 }
 0x224   : > { %v1059_v51 = vpop.permute.xlu2 %1058  ;;  %v3711_v2 = vadd.f32 %v1443_v57, %v1440_v41  ;;  %1874 = vmatpush.msrb.mxu3 %v1873_v34  ;;  %v1885_v41 = vand.u32 4294901760, %v1884_v27 }
 0x225   : > { %1066 = vst.msk [vmem:[#allocation2 + $0x70] sm:$0xff] %vm679_vm0, %v1059_v51  ;;  %v1629_v51 = vsub.f32 %v1598_v37, %v3693_v40  ;;  %v1466_v20 = vmul.f32 %v1464_v3, %v3726_v14  ;;  %1952 = vmatpush.msrb.mxu1 %v3705_v60  ;;  %v1423_v3 = vmul.f32 %v3672_v7, %v3689_v29 }
 0x226   : > { %v1467_v21 = vmul.f32 %v1465_v12, %v3711_v2 }
 0x227   : > { %v1630_v0 = vand.u32 4294901760, %v1629_v51  ;;  %1713 = vmatmul.f32.gmra.mxu2 %v1629_v51  ;;  %v1471_v38 = vadd.f32 %v1469_v30, %v1466_v20  ;;  %1954 = vmatpush.msrb.mxu1 %v3707_v62 }
 0x228   : > { %v1472_v39 = vadd.f32 %v1470_v58, %v1467_v21 }
 0x229   : > { %v1631_v13 = vsub.f32 %v1629_v51, %v1630_v0  ;;  %1746 = vmatmul.f32.gmra.mxu3 %v1630_v0  ;;  %v2732_v51 = vld [vmem:[#allocation4 + $0x4] ss:$0 sm:$0xff]  ;;  %v1396_v0 = vmul.f32 %v3638_v43, %v3652_v54  ;;  %v1369_v43 = vmul.f32 %v3618_v23, %v3626_v32  ;;  %v1517_v54 = vmul.f32 %v2733_v5, %v1501_v56 }
 0x22a   : > { %v1011_v16 = vpop.permute.xlu1 %1010  ;;  %1808 = vmatmul.f32.vlgmr.msra.gmra.mxu1 %v3663_v63  ;;  %v1425_v23 = vsel %vm1370_vm11, %v1423_v3, 0.0  ;;  %v1477_v20 = vmul.f32 %v1473_v28, %v1471_v38 }
 0x22b   : > { %1014 = vst.msk [vmem:[#allocation2 + $0x48] sm:$0xff] %vm928_vm10, %v1011_v16  ;;  %v1877_v16 = vand.u32 4294901760, %v3720_v10  ;;  %v1632_v18 = vand.u32 4294901760, %v1631_v13  ;;  %v1368_v13 = vmul.f32 %v3621_v25, %v3629_v35  ;;  %v1398_v29 = vsel %vm1370_vm11, %v1396_v0, 0.0 }
 0x22c   : > { %v1372_v14 = vsel %vm1370_vm11, %v1369_v43, 0.0  ;;  %v1519_v21 = vsub.f32 1.0, %v1517_v54  ;;  %v2736_v54 = vld [vmem:[#allocation4 + $0x6] ss:$0 sm:$0xff] }
 0x22d   : > { %v1070_v31 = vpop.permute.xlu2 %1069  ;;  %v1878_v26 = vsub.f32 %v3720_v10, %v1877_v16  ;;  %1633 = vmatmul.f32.gmra.mxu0 %v1632_v18  ;;  %v1371_v24 = vsel %vm1370_vm11, %v1368_v13, 0.0 }
 0x22e   : > { %1076 = vst.msk [vmem:[#allocation2 + $0x70] sm:$0xff] %vm928_vm10, %v1070_v31  ;;  %v1489_v31 = vmul.f32 %v2731_v6, %v1473_v28 }
 0x22f   : > { %v1879_v37 = vand.u32 4294901760, %v1878_v26 }
 0x230   : > { %v1491_v48 = vsub.f32 1.0, %v1489_v31 }
 0x231   : > { %1880 = vmatpush.msrb.mxu3 %v1879_v37 }
 0x232   : > { %v3713_v4 = vld [vmem:[#allocation2 + $0x48] sm:$0xff]  ;;  %v1493_v53 = vmul.f32 %v1491_v48, %v1471_v38  ;;  %v1524_v48 = vmul.f32 %v2734_v49, %v1501_v56  ;;  %1812 = vmatmul.f32.gmra.mxu1 %v3693_v40 }
 0x233   : > { %v1028_v8 = vpop.permute.xlu1 %1027  ;;  %v1490_v15 = vmul.f32 %v2731_v6, %v3713_v4  ;;  %v1497_v55 = vmul.f32 %v2732_v51, %v3713_v4  ;;  %1886 = vmatpush.msrb.mxu3 %v1885_v41  ;;  %v1424_v6 = vmul.f32 %v3661_v61, %v3682_v19  ;;  %v1399_v61 = vsel %vm1370_vm11, %v1397_v1, 0.0 }
 0x234   : > { %1034 = vst.msk [vmem:[#allocation2 + $0x50] sm:$0xff] %vm928_vm10, %v1028_v8  ;;  %v1496_v8 = vmul.f32 %v2732_v51, %v1473_v28  ;;  %v1451_v19 = vmul.f32 %v3696_v45, %v3711_v2  ;;  %v1478_v25 = vmul.f32 %v3713_v4, %v1472_v39  ;;  %v1400_v45 = vadd.f32 %v1399_v61, %v1398_v29 }
 0x235   : > { %v1492_v33 = vsub.f32 1.0, %v1490_v15  ;;  %1779 = vmatmul.f32.vlgmr.msra.gmra.mxu0 %v3663_v63  ;;  %v1426_v32 = vsel %vm1370_vm11, %v1424_v6, 0.0  ;;  %v2735_v15 = vld [vmem:[#allocation3 + $0x6] ss:$0 sm:$0xff]  ;;  %v1452_v2 = vsel %vm1370_vm11, %v1450_v36, 0.0  ;;  %v1074_v36 = vpop.permute.xlu0 %1073 }
 0x236   : > { %v1498_v46 = vadd.f32 %v1496_v8, %v1493_v53  ;;  %v1427_v27 = vadd.f32 %v1426_v32, %v1425_v23  ;;  %v1453_v30 = vsel %vm1370_vm11, %v1451_v19, 0.0  ;;  %v1480_v58 = vsel %vm1370_vm11, %v1478_v25, 0.0 }
 0x237   : > { %v1494_v50 = vmul.f32 %v1492_v33, %v1472_v39  ;;  %v1586_v33 = vld [vmem:[#allocation16] sm:$0xff]  ;;  %v1373_v39 = vadd.f32 %v1372_v14, %v1371_v24  ;;  %v1454_v41 = vadd.f32 %v1453_v30, %v1452_v2  ;;  %v1401_v53 = vrot.slane %v1400_v45, 4 }
 0x238   : > { %v3793_v38 = vand.u32 4294901760, %v1586_v33 }
 0x239   : > { %v1499_v12 = vadd.f32 %v1497_v55, %v1494_v50  ;;  %v1428_v55 = vrot.slane %v1427_v27, 4  ;;  %v1455_v1 = vrot.slane %v1454_v41, 4  ;;  %v1402_v9 = vadd.f32 %v1401_v53, %v1400_v45 }
 0x23a   : > { %1839 = vmatpush.msrb.mxu2 %v3793_v38  ;;  %1956 = vmatpush.msrb.mxu1 %v3793_v38 }
 0x23b   : > { %v1500_v44 = vld [vmem:[#allocation2 + $0x50] sm:$0xff]  ;;  %v1505_v63 = vmul.f32 %v1501_v56, %v1499_v12  ;;  %v1521_v31 = vmul.f32 %v1519_v21, %v1499_v12  ;;  %v1456_v25 = vadd.f32 %v1455_v1, %v1454_v41 }
 0x23c   : > { %v1038_v47 = vpop.permute.xlu1 %1037  ;;  %v1516_v57 = vmul.f32 %v2733_v5, %v1500_v44  ;;  %v1504_v35 = vmul.f32 %v1500_v44, %v1498_v46  ;;  %v1523_v37 = vmul.f32 %v2734_v49, %v1500_v44  ;;  %1985 = vmatpush.msra.mxu2 %v1871_v42  ;;  %v1429_v42 = vadd.f32 %v1428_v55, %v1427_v27 }
 0x23d   : > { %1045 = vst.msk [vmem:[#allocation2 + $0x60] sm:$0xff] %vm679_vm0, %v1038_v47  ;;  %1783 = vmatmul.f32.gmra.mxu0 %v3693_v40  ;;  %v1507_v34 = vsel %vm1370_vm11, %v1505_v63, 0.0  ;;  %v1479_v47 = vsel %vm1370_vm11, %v1477_v20, 0.0  ;;  %v1526_v44 = vadd.f32 %v1524_v48, %v1521_v31  ;;  %v1374_v40 = vrot.slane %v1373_v39, 4 }
 0x23e   : > { %1055 = vst.msk [vmem:[#allocation2 + $0x60] sm:$0xff] %vm928_vm10, %v1049_v52  ;;  %v1518_v7 = vsub.f32 1.0, %v1516_v57  ;;  %v1506_v28 = vsel %vm1370_vm11, %v1504_v35, 0.0  ;;  %v1481_v50 = vadd.f32 %v1480_v58, %v1479_v47  ;;  %v1888_v52 = vsub.f32 %v1586_v33, %v3793_v38  ;;  %1989 = vmatpush.msra.mxu2 %v1877_v16 }
 0x23f   : > { %v1508_v57 = vadd.f32 %v1507_v34, %v1506_v28  ;;  %v1375_v19 = vadd.f32 %v1374_v40, %v1373_v39  ;;  %v1457_v21 = vrot.slane %v1456_v25, 2 }
 0x240   : > { %v1520_v4 = vmul.f32 %v1518_v7, %v1498_v46  ;;  %v1889_v56 = vand.u32 4294901760, %v1888_v52  ;;  %1925 = vmatpush.msrb.mxu0 %v1888_v52  ;;  %v1482_v8 = vrot.slane %v1481_v50, 4  ;;  %1993 = vmatpush.msra.mxu2 %v1883_v17  ;;  %v1430_v17 = vrot.slane %v1429_v42, 2 }
 0x241   : > { %v1509_v46 = vrot.slane %v1508_v57, 4  ;;  %v1376_v20 = vrot.slane %v1375_v19, 2  ;;  %v1458_v34 = vadd.f32 %v1457_v21, %v1456_v25 }
 0x242   : > { %v1525_v51 = vadd.f32 %v1523_v37, %v1520_v4  ;;  %v1890_v7 = vsub.f32 %v1888_v52, %v1889_v56  ;;  %1997 = vmatpush.msra.mxu2 %v1889_v56  ;;  %v1483_v35 = vadd.f32 %v1482_v8, %v1481_v50  ;;  %v1431_v58 = vadd.f32 %v1430_v17, %v1429_v42 }
 0x243   : > { %v1510_v24 = vadd.f32 %v1509_v46, %v1508_v57  ;;  %v1377_v28 = vadd.f32 %v1376_v20, %v1375_v19 }
 0x244   : > { %v1891_v32 = vand.u32 4294901760, %v1890_v7  ;;  %v1484_v2 = vrot.slane %v1483_v35, 2  ;;  %v1432_v48 = vrot.slane %v1431_v58, 1 }
 0x245   : > { %v1053_v18 = vpop.permute.xlu1 %1052  ;;  %v1527_v22 = vld [vmem:[#allocation2 + $0x60] sm:$0xff]  ;;  %v1511_v27 = vrot.slane %v1510_v24, 2 }
 0x246   : > { %1056 = vst.msk [vmem:[#allocation2 + $0x68] sm:$0xff] %vm928_vm10, %v1053_v18  ;;  %v1543_v26 = vmul.f32 %v2735_v15, %v1527_v22  ;;  %v1531_v0 = vmul.f32 %v1527_v22, %v1525_v51  ;;  %v1550_v61 = vmul.f32 %v2736_v54, %v1527_v22  ;;  %v1403_v18 = vrot.slane %v1402_v9, 2  ;;  %1892 = vmatpush.msrb.mxu3 %v1891_v32  ;;  %v1554_v22 = vld [vmem:[#allocation2 + $0x70] sm:$0xff] }
 0x247   : > { %v1512_v47 = vadd.f32 %v1511_v27, %v1510_v24 }
 0x248   : > { %v1545_v5 = vsub.f32 1.0, %v1543_v26  ;;  %v1533_v10 = vsel %vm1370_vm11, %v1531_v0, 0.0  ;;  %2020 = vmatpush.msra.mxu3 %v3703_v59  ;;  %v1404_v26 = vadd.f32 %v1403_v18, %v1402_v9  ;;  %v1485_v59 = vadd.f32 %v1484_v2, %v1483_v35 }
 0x24a   : > { %v1547_v43 = vmul.f32 %v1545_v5, %v1525_v51  ;;  %2022 = vmatpush.msra.mxu3 %v3705_v60  ;;  %v1405_v41 = vrot.slane %v1404_v26, 1  ;;  %v1378_v51 = vrot.slane %v1377_v28, 1  ;;  %v1459_v5 = vrot.slane %v1458_v34, 1 }
 0x24b   : > { %v1486_v53 = vrot.slane %v1485_v59, 1 }
 0x24c   : > { %2024 = vmatpush.msra.mxu3 %v3707_v62  ;;  %v1406_v55 = vadd.f32 %v1405_v41, %v1404_v26  ;;  %v1513_v62 = vrot.slane %v1512_v47, 1  ;;  %v1379_v56 = vadd.f32 %v1378_v51, %v1377_v28  ;;  %v1460_v40 = vadd.f32 %v1459_v5, %v1458_v34 }
 0x24d   : > { %v1528_v3 = vld [vmem:[#allocation2 + $0x68] sm:$0xff] }
 0x24e   : > { %v1063_v6 = vpop.permute.xlu1 %1062  ;;  %v1532_v12 = vmul.f32 %v1528_v3, %v1526_v44  ;;  %v1544_v13 = vmul.f32 %v2735_v15, %v1528_v3  ;;  %v1552_v15 = vadd.f32 %v1550_v61, %v1547_v43  ;;  %v1551_v14 = vmul.f32 %v2736_v54, %v1528_v3  ;;  %2026 = vmatpush.msra.mxu3 %v3793_v38 }
 0x24f   : > { %1067 = vst.msk [vmem:[#allocation2 + $0x78] sm:$0xff] %vm679_vm0, %v1063_v6  ;;  %v1487_v38 = vadd.f32 %v1486_v53, %v1485_v59  ;;  %v1514_v3 = vadd.f32 %v1513_v62, %v1512_v47  ;;  %v1568_v8 = vsel %vm1567_vm12, %v1379_v56, %v1406_v55  ;;  %v2045_v59 = vld [vmem:[#allocation19 + $0x8] sm:$0xff] }
 0x250   : > { %1077 = vst.msk [vmem:[#allocation2 + $0x78] sm:$0xff] %vm928_vm10, %v1074_v36  ;;  %v1534_v16 = vsel %vm1370_vm11, %v1532_v12, 0.0  ;;  %v1546_v29 = vsub.f32 1.0, %v1544_v13  ;;  %v1556_v49 = vmul.f32 %v1554_v22, %v1552_v15  ;;  %v2074_v47 = vand.u32 4294901760, %v2045_v59 }
 0x251   : > { %v1535_v23 = vadd.f32 %v1534_v16, %v1533_v10 }
 0x252   : > { %v1548_v63 = vmul.f32 %v1546_v29, %v1526_v44  ;;  %v1558_v37 = vsel %vm1370_vm11, %v1556_v49, 0.0  ;;  %v1433_v44 = vadd.f32 %v1432_v48, %v1431_v58  ;;  %v2047_v49 = vld [vmem:[#allocation19 + $0x18] sm:$0xff]  ;;  %v2044_v48 = vld [vmem:[#allocation19] sm:$0xff]  ;;  %v2120_v5 = vsub.f32 %v2045_v59, %v2074_v47 }
 0x253   : > { %v1536_v11 = vrot.slane %v1535_v23, 4 }
 0x254   : > { %v1553_v4 = vadd.f32 %v1551_v14, %v1548_v63  ;;  %v1570_v13 = vsel %vm1569_vm13, %v1568_v8, %v1433_v44  ;;  %v2121_v44 = vand.u32 4294901760, %v2120_v5 }
 0x255   : > { %v1537_v45 = vadd.f32 %v1536_v11, %v1535_v23  ;;  %v1572_v54 = vsel %vm1571_vm14, %v1570_v13, %v1460_v40 }
 0x256   : > { %v1574_v36 = vsel %vm1573_vm15, %v1572_v54, %v1487_v38 }
 0x257   : > { %v1555_v30 = vld [vmem:[#allocation2 + $0x78] sm:$0xff]  ;;  %v1538_v31 = vrot.slane %v1537_v45, 2  ;;  %v1576_v42 = vsel %vm1575_vm1, %v1574_v36, %v1514_v3  ;;  %v2122_v3 = vsub.f32 %v2120_v5, %v2121_v44 }
 0x258   : > { %v1557_v33 = vmul.f32 %v1555_v30, %v1553_v4  ;;  %v2070_v30 = vand.u32 4294901760, %v2047_v49 }
 0x259   : > { %v1539_v50 = vadd.f32 %v1538_v31, %v1537_v45  ;;  %v2046_v31 = vld [vmem:[#allocation19 + $0x10] sm:$0xff] }
 0x25a   : > { %v1559_v39 = vsel %vm1370_vm11, %v1557_v33, 0.0  ;;  %2071 = vmatpush.msra.mxu0 %v2070_v30  ;;  %v2108_v33 = vsub.f32 %v2047_v49, %v2070_v30  ;;  %v2072_v28 = vand.u32 4294901760, %v2046_v31 }
 0x25b   : > { %v1560_v60 = vadd.f32 %v1559_v39, %v1558_v37  ;;  %v1540_v0 = vrot.slane %v1539_v50, 1 }
 0x25c   : > { %v2109_v39 = vand.u32 4294901760, %v2108_v33  ;;  %v2114_v41 = vsub.f32 %v2046_v31, %v2072_v28  ;;  %2073 = vmatpush.msra.mxu0 %v2072_v28 }
 0x25d   : > { %v1561_v52 = vrot.slane %v1560_v60, 4  ;;  %v1541_v12 = vadd.f32 %v1540_v0, %v1539_v50 }
 0x25e   : > { %v2110_v50 = vsub.f32 %v2108_v33, %v2109_v39  ;;  %v2115_v51 = vand.u32 4294901760, %v2114_v41  ;;  %2075 = vmatpush.msra.mxu0 %v2074_v47 }
 0x25f   : > { %v1562_v57 = vadd.f32 %v1561_v52, %v1560_v60  ;;  %v1578_v46 = vsel %vm1577_vm2, %v1576_v42, %v1541_v12  ;;  %v2076_v52 = vand.u32 4294901760, %v2044_v48  ;;  %v2123_v12 = vand.u32 4294901760, %v2122_v3 }
 0x260   : > { %v2111_v62 = vand.u32 4294901760, %v2110_v50 }
 0x261   : > { %v1563_v1 = vrot.slane %v1562_v57, 2  ;;  %v2126_v0 = vsub.f32 %v2044_v48, %v2076_v52  ;;  %2077 = vmatpush.msra.mxu0 %v2076_v52  ;;  %v2738_v48 = vld [vmem:[%s3924_s18] ss:$0 sm:$0xff] }
 0x262   : > { %2112 = vmatpush.msra.mxu1 %v2111_v62 }
 0x263   : > { %v1564_v6 = vadd.f32 %v1563_v1, %v1562_v57  ;;  %v2116_v57 = vsub.f32 %v2114_v41, %v2115_v51 }
 0x265   : > { %v1565_v43 = vrot.slane %v1564_v6, 1  ;;  %v2117_v38 = vand.u32 4294901760, %v2116_v57 }
 0x267   : > { %v1566_v9 = vadd.f32 %v1565_v43, %v1564_v6  ;;  %v2127_v6 = vand.u32 4294901760, %v2126_v0  ;;  %2118 = vmatpush.msra.mxu1 %v2117_v38 }
 0x269   : > { %v1580_v7 = vsel %vm1579_vm3, %v1578_v46, %v1566_v9  ;;  %v2128_v13 = vsub.f32 %v2126_v0, %v2127_v6  ;;  %2124 = vmatpush.msra.mxu1 %v2123_v12 }
 0x26a   : > { %1582 = vrot.lane.b32.xlu1 %v1580_v7, %s3135_s5  ;;  %v1816_v10 = vsel %vm679_vm0, %v1580_v7, 0 }
 0x26b   : > { %v1840_v16 = vand.u32 4294901760, %v1816_v10  ;;  %v2129_v36 = vand.u32 4294901760, %v2128_v13 }
 0x26d   : > { %v1841_v29 = vsub.f32 %v1816_v10, %v1840_v16  ;;  %1894 = vmatmul.f32.vlgmr.msrb.gmra.mxu3 %v1840_v16  ;;  %2130 = vmatpush.msra.mxu1 %v2129_v36 }
 0x26e   : > { %2188 = vmatpush.msrb.mxu3 %v2070_v30 }
 0x26f   : > { %1928 = vmatmul.f32.vlgmr.msrb.gmra.mxu0 %v1841_v29  ;;  %v1842_v61 = vand.u32 4294901760, %v1841_v29 }
 0x270   : > { %2190 = vmatpush.msrb.mxu3 %v2072_v28  ;;  %2223 = vmatpush.msrb.mxu0 %v2109_v39 }
 0x271   : > { %1960 = vmatmul.f32.vlgmr.msrb.gmra.mxu1 %v1842_v61  ;;  %v1843_v19 = vsub.f32 %v1841_v29, %v1842_v61 }
 0x272   : > { %2192 = vmatpush.msrb.mxu3 %v2074_v47  ;;  %2227 = vmatpush.msrb.mxu0 %v2115_v51 }
 0x273   : > { %v1844_v25 = vand.u32 4294901760, %v1843_v19  ;;  %2258 = vmatpush.msrb.mxu1 %v2070_v30 }
 0x274   : > { %2194 = vmatpush.msrb.mxu3 %v2076_v52  ;;  %2231 = vmatpush.msrb.mxu0 %v2121_v44 }
 0x275   : > { %1845 = vmatmul.f32.vlgmr.msrb.gmra.mxu2 %v1844_v25  ;;  %2260 = vmatpush.msrb.mxu1 %v2072_v28 }
 0x276   : > { %2154 = vmatpush.msrb.mxu2 %v2108_v33  ;;  %2235 = vmatpush.msrb.mxu0 %v2127_v6 }
 0x277   : > { %2262 = vmatpush.msrb.mxu1 %v2074_v47 }
 0x278   : > { %2157 = vmatpush.msrb.mxu2 %v2114_v41 }
 0x279   : > { %2264 = vmatpush.msrb.mxu1 %v2076_v52 }
 0x27a   : > { %2160 = vmatpush.msrb.mxu2 %v2120_v5 }
 0x27c   : > { %2163 = vmatpush.msrb.mxu2 %v2126_v0 }
 0x287   : > { %v1709_v21 = vpop.f32.mrf.mxu2 }
 0x28c   : > { %v1741_v14 = vpop.f32.mrf.mxu3 }
 0x293   : > { %v1626_v11 = vpop.f32.mrf.mxu0 }
 0x297   : > { %v1675_v17 = vpop.f32.mrf.mxu1 }
 0x298   : > { %v1676_v45 = vadd.f32 %v1675_v17, %v1626_v11 }
 0x29a   : > { %v1710_v2 = vadd.f32 %v1709_v21, %v1676_v45 }
 0x29c   : > { %v1742_v58 = vadd.f32 %v1741_v14, %v1710_v2 }
 0x29f   : > { %v1679_v22 = vpop.f32.mrf.mxu1 }
 0x2a7   : > { %v1809_v37 = vpop.f32.mrf.mxu1 }
 0x2aa   : > { %v1634_v20 = vpop.f32.mrf.mxu0  ;;  %v1714_v27 = vpop.f32.mrf.mxu2 }
 0x2ab   : > { %v1680_v34 = vadd.f32 %v1679_v22, %v1634_v20 }
 0x2ac   : > { %v1747_v4 = vpop.f32.mrf.mxu3 }
 0x2ad   : > { %v1715_v53 = vadd.f32 %v1714_v27, %v1680_v34 }
 0x2af   : > { %v1748_v8 = vadd.f32 %v1747_v4, %v1715_v53  ;;  %v1813_v54 = vpop.f32.mrf.mxu1 }
 0x2b2   : > { %v1780_v26 = vpop.f32.mrf.mxu0 }
 0x2b3   : > { %v1781_v60 = vadd.f32 %v1780_v26, %v1742_v58 }
 0x2b5   : > { %v1810_v56 = vadd.f32 %v1809_v37, %v1781_v60 }
 0x2ba   : > { %v1784_v40 = vpop.f32.mrf.mxu0 }
 0x2bb   : > { %v1785_v9 = vadd.f32 %v1784_v40, %v1748_v8 }
 0x2bd   : > { %v1814_v10 = vadd.f32 %v1813_v54, %v1785_v9 }
 0x2dc   : > { %v1583_v23 = vpop.permute.xlu1 %1582 }
 0x2dd   : > { %v1818_v32 = vsel %vm679_vm0, %v1583_v23, 0 }
 0x2de   : > { %v1848_v35 = vand.u32 4294901760, %v1818_v32 }
 0x2e0   : > { %v1849_v63 = vsub.f32 %v1818_v32, %v1848_v35  ;;  %1898 = vmatmul.f32.gmra.mxu3 %v1848_v35 }
 0x2e2   : > { %1933 = vmatmul.f32.gmra.mxu0 %v1849_v63  ;;  %v1850_v15 = vand.u32 4294901760, %v1849_v63 }
 0x2e4   : > { %1966 = vmatmul.f32.gmra.mxu1 %v1850_v15  ;;  %v1851_v18 = vsub.f32 %v1849_v63, %v1850_v15  ;;  %v2737_v15 = vld [vmem:[%s3871_s10] ss:$0 sm:$0xff] }
 0x2e6   : > { %v1852_v24 = vand.u32 4294901760, %v1851_v18 }
 0x2e8   : > { %1853 = vmatmul.f32.gmra.mxu2 %v1852_v24  ;;  %2028 = vmatmul.f32.vlgmr.msra.gmra.mxu3 %v1840_v16 }
 0x2ee   : > { %v1961_v19 = vpop.f32.mrf.mxu1 }
 0x2f0   : > { %1999 = vmatmul.f32.vlgmr.msra.gmra.mxu2 %v1840_v16  ;;  %2032 = vmatmul.f32.gmra.mxu3 %v1848_v35  ;;  %v1895_v55 = vpop.f32.mrf.mxu3  ;;  %v1929_v16 = vpop.f32.mrf.mxu0 }
 0x2f8   : > { %2003 = vmatmul.f32.gmra.mxu2 %v1848_v35  ;;  %v1846_v1 = vpop.f32.mrf.mxu2 }
 0x2f9   : > { %v1847_v43 = vadd.f32 %v1846_v1, %v1810_v56 }
 0x2fb   : > { %v1896_v46 = vadd.f32 %v1895_v55, %v1847_v43 }
 0x2fd   : > { %v1930_v61 = vadd.f32 %v1929_v16, %v1896_v46 }
 0x2ff   : > { %v1962_v23 = vadd.f32 %v1961_v19, %v1930_v61 }
 0x35f   : > { %v1934_v18 = vpop.f32.mrf.mxu0 }
 0x361   : > { %v1967_v14 = vpop.f32.mrf.mxu1 }
 0x363   : > { %v1899_v42 = vpop.f32.mrf.mxu3 }
 0x36b   : > { %v1854_v7 = vpop.f32.mrf.mxu2  ;;  %v2029_v32 = vpop.f32.mrf.mxu3 }
 0x36c   : > { %v1855_v29 = vadd.f32 %v1854_v7, %v1814_v10 }
 0x36e   : > { %v1900_v25 = vadd.f32 %v1899_v42, %v1855_v29 }
 0x370   : > { %v1935_v11 = vadd.f32 %v1934_v18, %v1900_v25 }
 0x372   : > { %v1968_v20 = vadd.f32 %v1967_v14, %v1935_v11 }
 0x373   : > { %v2000_v35 = vpop.f32.mrf.mxu2  ;;  %v2033_v22 = vpop.f32.mrf.mxu3 }
 0x374   : > { %v2001_v63 = vadd.f32 %v2000_v35, %v1962_v23 }
 0x376   : > { %v2030_v24 = vadd.f32 %v2029_v32, %v2001_v63 }
 0x378   : > { %v2040_v17 = vadd.f32 %v2737_v15, %v2030_v24 }
 0x37a   : > { %2757 = vtanh.f32 %v2040_v17 }
 0x37b   : > { %v2004_v21 = vpop.f32.mrf.mxu2 }
 0x37c   : > { %v2005_v45 = vadd.f32 %v2004_v21, %v1968_v20 }
 0x37e   : > { %v2034_v2 = vadd.f32 %v2033_v22, %v2005_v45 }
 0x380   : > { %v2758_v4 = vpop.eup %2757  ;;  %v2041_v49 = vadd.f32 %v2737_v15, %v2034_v2 }
 0x381   : > { %v2053_v26 = vsel %vm679_vm0, %v2758_v4, 0 }
 0x382   : > { %2759 = vtanh.f32 %v2041_v49  ;;  %v2078_v27 = vand.u32 4294901760, %v2053_v26 }
 0x384   : > { %2132 = vmatmul.f32.vlgmr.msra.gmra.mxu1 %v2078_v27  ;;  %v2079_v30 = vsub.f32 %v2053_v26, %v2078_v27 }
 0x386   : > { %2166 = vmatmul.f32.vlgmr.msrb.gmra.mxu2 %v2079_v30  ;;  %v2080_v58 = vand.u32 4294901760, %v2079_v30 }
 0x388   : > { %v2760_v31 = vpop.eup %2759  ;;  %2198 = vmatmul.f32.vlgmr.msrb.gmra.mxu3 %v2080_v58  ;;  %v2081_v33 = vsub.f32 %v2079_v30, %v2080_v58 }
 0x389   : > { %v2056_v28 = vsel %vm679_vm0, %v2760_v31, 0 }
 0x38a   : > { %v2082_v34 = vand.u32 4294901760, %v2081_v33  ;;  %v2086_v59 = vand.u32 4294901760, %v2056_v28 }
 0x38c   : > { %2083 = vmatmul.f32.vlgmr.msra.gmra.mxu0 %v2082_v34  ;;  %2136 = vmatmul.f32.gmra.mxu1 %v2086_v59  ;;  %v2087_v37 = vsub.f32 %v2056_v28, %v2086_v59 }
 0x38e   : > { %2171 = vmatmul.f32.gmra.mxu2 %v2087_v37  ;;  %v2088_v39 = vand.u32 4294901760, %v2087_v37 }
 0x390   : > { %2204 = vmatmul.f32.gmra.mxu3 %v2088_v39  ;;  %v2089_v41 = vsub.f32 %v2087_v37, %v2088_v39 }
 0x392   : > { %v2090_v47 = vand.u32 4294901760, %v2089_v41 }
 0x394   : > { %2091 = vmatmul.f32.gmra.mxu0 %v2090_v47  ;;  %2266 = vmatmul.f32.vlgmr.msrb.gmra.mxu1 %v2078_v27 }
 0x39c   : > { %2237 = vmatmul.f32.vlgmr.msrb.gmra.mxu0 %v2078_v27  ;;  %2270 = vmatmul.f32.gmra.mxu1 %v2086_v59 }
 0x3a4   : > { %2241 = vmatmul.f32.gmra.mxu0 %v2086_v59 }
 0x401   : > { %v2133_v60 = vpop.f32.mrf.mxu1 }
 0x409   : > { %v2084_v50 = vpop.f32.mrf.mxu0  ;;  %v2137_v5 = vpop.f32.mrf.mxu1 }
 0x40a   : > { %v2085_v51 = vadd.f32 %v2738_v48, %v2084_v50  ;;  %v2167_v53 = vpop.f32.mrf.mxu2 }
 0x40b   : > { %v2199_v44 = vpop.f32.mrf.mxu3 }
 0x40c   : > { %v2134_v52 = vadd.f32 %v2133_v60, %v2085_v51 }
 0x40e   : > { %v2168_v62 = vadd.f32 %v2167_v53, %v2134_v52 }
 0x410   : > { %v2200_v0 = vadd.f32 %v2199_v44, %v2168_v62 }
 0x411   : > { %v2092_v55 = vpop.f32.mrf.mxu0  ;;  %v2267_v40 = vpop.f32.mrf.mxu1 }
 0x412   : > { %v2093_v57 = vadd.f32 %v2738_v48, %v2092_v55  ;;  %v2172_v3 = vpop.f32.mrf.mxu2 }
 0x413   : > { %v2205_v13 = vpop.f32.mrf.mxu3 }
 0x414   : > { %v2138_v56 = vadd.f32 %v2137_v5, %v2093_v57 }
 0x416   : > { %v2173_v6 = vadd.f32 %v2172_v3, %v2138_v56 }
 0x418   : > { %v2206_v43 = vadd.f32 %v2205_v13, %v2173_v6 }
 0x419   : > { %v2238_v1 = vpop.f32.mrf.mxu0  ;;  %v2271_v9 = vpop.f32.mrf.mxu1 }
 0x41a   : > { %v2239_v38 = vadd.f32 %v2238_v1, %v2200_v0 }
 0x41c   : > { %v2268_v8 = vadd.f32 %v2267_v40, %v2239_v38 }
 0x41e   : > { %v2534_v12 = vmul.f32 -1.442695, %v2268_v8 }
 0x420   : > { %2761 = vpow2.f32 %v2534_v12 }
 0x421   : > { %v2242_v54 = vpop.f32.mrf.mxu0 }
 0x422   : > { %v2243_v36 = vadd.f32 %v2242_v54, %v2206_v43 }
 0x424   : > { %v2272_v42 = vadd.f32 %v2271_v9, %v2243_v36 }
 0x426   : > { %v2762_v46 = vpop.eup %2761  ;;  %v2535_v7 = vmul.f32 -1.442695, %v2272_v42 }
 0x427   : > { %v2280_v10 = vadd.f32 1.0, %v2762_v46 }
 0x428   : > { %2763 = vpow2.f32 %v2535_v7 }
 0x429   : > { %2765 = vrcp.f32 %v2280_v10  ;;  %v2293_v23 = vand.u32 2147483648, %v2280_v10  ;;  %v2291_v35 = vand.u32 2147483647, %v2280_v10  ;;  %vm2287_vm4 = vweird.f32 %v2280_v10 }
 0x42b   : > { %v2294_v18 = vor.u32 1.1754944e-38, %v2293_v23  ;;  %vm2292_vm6 = vcmp.eq.f32.partialorder %v2291_v35, 8.507059e+37 }
 0x42e   : > { %v2764_v16 = vpop.eup %2763 }
 0x42f   : > { %v2766_v29 = vpop.eup %2765  ;;  %v2281_v61 = vadd.f32 1.0, %v2764_v16 }
 0x430   : > { %v2283_v19 = vmul.f32 %v2766_v29, %v2280_v10  ;;  %vm2288_vm0 = vweird.f32 %v2766_v29 }
 0x431   : > { %2767 = vrcp.f32 %v2281_v61  ;;  %vm2289_vm5 = vmor %vm2287_vm4, %vm2288_vm0  ;;  %v2308_v20 = vand.u32 2147483648, %v2281_v61  ;;  %v2306_v45 = vand.u32 2147483647, %v2281_v61  ;;  %vm2302_vm8 = vweird.f32 %v2281_v61 }
 0x432   : > { %v2284_v25 = vsub.f32 1.0, %v2283_v19 }
 0x433   : > { %v2309_v2 = vor.u32 1.1754944e-38, %v2308_v20  ;;  %vm2307_vm10 = vcmp.eq.f32.partialorder %v2306_v45, 8.507059e+37 }
 0x434   : > { %v2285_v32 = vmul.f32 %v2766_v29, %v2284_v25 }
 0x436   : > { %v2286_v63 = vadd.f32 %v2766_v29, %v2285_v32 }
 0x437   : > { %v2768_v15 = vpop.eup %2767 }
 0x438   : > { %v2298_v24 = vmul.f32 %v2768_v15, %v2281_v61  ;;  %v2290_v11 = vsel %vm2289_vm5, %v2766_v29, %v2286_v63  ;;  %vm2303_vm7 = vweird.f32 %v2768_v15 }
 0x439   : > { %v2295_v17 = vsel %vm2292_vm6, %v2294_v18, %v2290_v11  ;;  %vm2304_vm9 = vmor %vm2302_vm8, %vm2303_vm7 }
 0x43a   : > { %v2299_v14 = vsub.f32 1.0, %v2298_v24  ;;  %2312 = vst [vmem:[%s640_s4] sm:$0xff] %v2295_v17 }
 0x43c   : > { %v2300_v21 = vmul.f32 %v2768_v15, %v2299_v14 }
 0x43e   : > { %v2301_v22 = vadd.f32 %v2768_v15, %v2300_v21 }
 0x440   : > { %v2305_v4 = vsel %vm2304_vm9, %v2768_v15, %v2301_v22 }
 0x441   : > { %v2310_v49 = vsel %vm2307_vm10, %v2309_v2, %v2305_v4 }
 0x442   : > { %2313 = vst [vmem:[%s640_s4 + $0x8] sm:$0xff] %v2310_v49 }
 0x443   : > { %3066 = shalt.err (!%p3063_p3)
}
 0x444   : > { %s3151_s22 = smov 128   ;;  %s3152_s13 = smov 8  }
 0x445   : > { %2579 = dma.vmem_to_hbm [thread:$0]  (%p3308_p0), %s2328_s14, 256, %s2330_s12, %s2315_s28, %s3151_s22, %s3151_s22, %s3152_s13  }
 0x446 PF: > { %s3927_s6 = sld [smem:[#allocation27_spill]] }
 0x447   : > { %s3929_s17 = sld [smem:[#allocation28_spill]] }
 0x44c   : > { %s2344_s24 = sand.u32 1, %s3927_s6  }
 0x44d   : > { %p3930_p8 = scmp.ge.s32.totalorder %s3929_s17, 2  ;;  %s2345_s18 = scalar_lea.sflag [#allocation7], %s2344_s24 }
 0x44f   : > { %p2611_p9 = pnand %p3930_p8, %p3314_p5 }
 0x451   : > { %p2612_p2 = pneg %p2611_p9 }
 0x453   : > { %3104 = dma.done.wait (%p2612_p2), %s2345_s18, 256  }
 0x454   : > { %3106 = vsyncadd (%p2612_p2), %s2345_s18, 4294967040  ;;  %s3931_s27 = sld [smem:[#allocation29_spill]]  ;;  %s3933_s24 = smov %s3113_s25 }
 0x455   : > { %s3932_s30 = sld [smem:[#allocation30_spill]]  ;;  %s3934_s25 = smov %s3117_s26 }
 0x45a   : > { %p32_p4 = scmp.ge.s32.totalorder %s3931_s27, 4  }
 0x45b   : > { %s3935_s26 = smov %s3932_s30 }
 0x45c   :  { %34 = sbr.rel (!%p32_p4) target bundleno = 19 (0x13), region = 179 }
 0x461   :  { %2351 = vsyncpa [#allocation6], 1 }
 0x462   :  { %2353 = vsyncpa [#allocation6 + $0x1], 1 }
 0x463   :  { %2354 = vsyncpa [#allocation9], 1 }
 0x464   :  { %2356 = vsyncpa [#allocation9 + $0x1], 1 }
 0x465   :  { %2357 = vsyncpa [#allocation12], 1 }
 0x466   :  { %2358 = vsyncpa [#allocation15], 1 }
 0x467   :  { %2359 = vsyncpa [#allocation18], 1 }
 0x468   :  { %2360 = vsyncpa [#allocation7], 1 }
 0x469   :  { %2362 = vsyncpa [#allocation7 + $0x1], 1 }

</bundles_post_ra>
